<compile_context>
chip_gen: v6e
topology: v6e:2x2x1
jax: 0.10.0
libtpu: 0.0.40
codegen_flags: <defaults>
</compile_context>

<pallas_src>
import functools

import jax
import jax.numpy as jnp
from jax.experimental import pallas as pl
from jax.experimental.pallas import tpu as pltpu

# ----------------------------- config -------------------------------------
D_MODEL = 32
NHEADS = 4
DIM_FF = 64
NUM_LAYERS = 2
DROPOUT = 0.0          # eval mode -> dropout layers are identity
LN_EPS = 1e-5          # PyTorch LayerNorm default
NEG_INF = -1e9

SEQ = 8
BATCH = 2

PARAM_ORDER = (
    "wqkv_t", "bqkv", "wout_t", "bout",
    "ln1_g", "ln1_b",
    "w1_t", "b1", "w2_t", "b2",
    "ln2_g", "ln2_b",
)


# ----------------------------- kernel --------------------------------------
def _layer_norm(t, g, b):
    mu = jnp.mean(t, axis=-1, keepdims=True)
    var = jnp.mean((t - mu) ** 2, axis=-1, keepdims=True)
    return (t - mu) * jax.lax.rsqrt(var + LN_EPS) * g + b


def encoder_kernel(x_ref, bias_ref,
                   wqkv_ref, bqkv_ref, wout_ref, bout_ref,
                   g1_ref, gb1_ref,
                   w1_ref, bw1_ref, w2_ref, bw2_ref,
                   g2_ref, gb2_ref,
                   o_ref, *, num_layers, nheads):
    """Whole encoder stack (all layers, all batch elements) in one call.

    x_ref    : (N, D) flattened tokens, N = S*B, seq-major row order
    bias_ref : (N, N) additive attention bias (block-diagonal batch mask
               merged with the optional key-padding mask)
    The stacked per-layer params all carry a leading `num_layers` axis.
    """
    x = x_ref[...]                       # (N, D)
    bias = bias_ref[...]                 # (N, N)
    N, D = x.shape
    hd = D // nheads

    for li in range(num_layers):         # static unroll over layers
        # ---- multi-head self-attention ---------------------------------
        # (1/sqrt(hd) is already folded into the Q part of the QKV weights)
        qkv = jnp.dot(x, wqkv_ref[li],
                      preferred_element_type=jnp.float32) + bqkv_ref[li]  # (N, 3D)
        wout = wout_ref[li]              # (D, D)
        attn = jnp.zeros((N, D), jnp.float32)
        for h in range(nheads):          # static unroll over heads
            qh = qkv[:, h * hd:(h + 1) * hd]
            kh = qkv[:, D + h * hd:D + (h + 1) * hd]
            vh = qkv[:, 2 * D + h * hd:2 * D + (h + 1) * hd]
            # q @ k^T without an explicit transpose (contract last dims).
            s = jax.lax.dot_general(qh, kh, (((1,), (1,)), ((), ())),
                                    preferred_element_type=jnp.float32)   # (N, N)
            s = s + bias
            m = jnp.max(s, axis=-1, keepdims=True)
            e = jnp.exp(s - m)
            denom = jnp.sum(e, axis=-1, keepdims=True)
            # Deferred normalization: divide the small (N, hd) PV product
            # instead of the (N, N) probability matrix.
            oh = jnp.dot(e, vh, preferred_element_type=jnp.float32) / denom
            # Accumulate the per-head output projection (no concatenate).
            attn = attn + jnp.dot(oh, wout[h * hd:(h + 1) * hd, :],
                                  preferred_element_type=jnp.float32)
        attn = attn + bout_ref[li]

        # ---- residual + LayerNorm 1 (post-norm) -------------------------
        x = _layer_norm(x + attn, g1_ref[li], gb1_ref[li])

        # ---- feed-forward (ReLU); dropout = identity in eval mode -------
        h1 = jnp.dot(x, w1_ref[li], preferred_element_type=jnp.float32) + bw1_ref[li]
        h1 = jnp.maximum(h1, 0.0)
        h2 = jnp.dot(h1, w2_ref[li], preferred_element_type=jnp.float32) + bw2_ref[li]

        # ---- residual + LayerNorm 2 --------------------------------------
        x = _layer_norm(x + h2, g2_ref[li], gb2_ref[li])

    o_ref[...] = x


# ----------------------------- wrapper --------------------------------------
def stack_layer_params(layer_params):
    """Stack per-layer params along a leading layer axis; fold the attention
    1/sqrt(head_dim) scale into the Q part of the QKV weights/bias."""
    scale = 1.0 / jnp.sqrt(jnp.float32(D_MODEL // NHEADS))
    stacked = []
    for name in PARAM_ORDER:
        arr = jnp.stack([p[name] for p in layer_params], axis=0)
        if name in ("wqkv_t", "bqkv"):
            arr = arr.at[..., :D_MODEL].multiply(scale)   # Q columns only
        stacked.append(arr)
    return tuple(stacked)


@jax.jit
def _encoder_pallas(x_flat, bias, stacked):
    kern = functools.partial(encoder_kernel,
                             num_layers=NUM_LAYERS, nheads=NHEADS)
    n_in = 2 + len(stacked)
    in_specs = [pl.BlockSpec(memory_space=pltpu.MemorySpace.VMEM)
                for _ in range(n_in)]
    return pl.pallas_call(
        kern,
        out_shape=jax.ShapeDtypeStruct(x_flat.shape, jnp.float32),
        in_specs=in_specs,
        out_specs=pl.BlockSpec(memory_space=pltpu.MemorySpace.VMEM),
    )(x_flat, bias, *stacked)


def build_attention_bias(seq, batch, x_mask):
    """(N, N) additive bias for the flattened (seq-major) token slab.

    Blocks attention across different batch elements and applies the optional
    key-padding mask (True = padded key).  exp(-1e9 - m) underflows to exactly
    0 in f32, so joint softmax over the slab equals per-batch softmax.
    """
    n = seq * batch
    batch_of = jnp.arange(n) % batch
    same = batch_of[:, None] == batch_of[None, :]
    bias = jnp.where(same, 0.0, NEG_INF).astype(jnp.float32)
    if x_mask is not None:
        seq_of = jnp.arange(n) // batch
        key_pad = x_mask[batch_of, seq_of]            # (N,) bool
        bias = jnp.where(key_pad[None, :], NEG_INF, bias)
    return bias


def self_attention_encoder(x_sbd, layer_params, x_mask=None):
    """Forward pass matching SelfAttentionEncoder.forward (eval mode).

    x_sbd  : (S, B, d_model) -- PyTorch seq-major layout
    x_mask : optional (B, S) bool, True = padded key position
    """
    S, B, D = x_sbd.shape
    x_flat = x_sbd.reshape(S * B, D).astype(jnp.float32)   # contiguous, free
    bias = build_attention_bias(S, B, x_mask)
    stacked = stack_layer_params(layer_params)
    out_flat = _encoder_pallas(x_flat, bias, stacked)
    return out_flat.reshape(S, B, D)


# ----------------------------- params ---------------------------------------
def init_layer_params(key):
    ks = jax.random.split(key, 6)
    s = 0.05
    wqkv = jax.random.normal(ks[0], (3 * D_MODEL, D_MODEL), jnp.float32) * s
    bqkv = jax.random.normal(ks[1], (3 * D_MODEL,), jnp.float32) * s
    wout = jax.random.normal(ks[2], (D_MODEL, D_MODEL), jnp.float32) * s
    bout = jax.random.normal(ks[3], (D_MODEL,), jnp.float32) * s
    w1 = jax.random.normal(ks[4], (DIM_FF, D_MODEL), jnp.float32) * s
    b1 = jnp.zeros((DIM_FF,), jnp.float32)
    w2 = jax.random.normal(ks[5], (D_MODEL, DIM_FF), jnp.float32) * s
    b2 = jnp.zeros((D_MODEL,), jnp.float32)
    return {
        # weights pre-transposed so the kernel does row-major x @ W
        "wqkv_t": wqkv.T,                       # (D, 3D)
        "bqkv": bqkv.reshape(1, -1),            # (1, 3D)
        "wout_t": wout.T,                       # (D, D)
        "bout": bout.reshape(1, -1),            # (1, D)
        "ln1_g": jnp.ones((1, D_MODEL), jnp.float32),
        "ln1_b": jnp.zeros((1, D_MODEL), jnp.float32),
        "w1_t": w1.T,                           # (D, F)
        "b1": b1.reshape(1, -1),                # (1, F)
        "w2_t": w2.T,                           # (F, D)
        "b2": b2.reshape(1, -1),                # (1, D)
        "ln2_g": jnp.ones((1, D_MODEL), jnp.float32),
        "ln2_b": jnp.zeros((1, D_MODEL), jnp.float32),
    }


# ----------------------------- pure-JAX reference ----------------------------
def ref_layer(x_bsd, mask_bias, p):
    hd = D_MODEL // NHEADS
    qkv = x_bsd @ p["wqkv_t"] + p["bqkv"]
    q, k, v = jnp.split(qkv, 3, axis=-1)
    B, S, _ = x_bsd.shape
    qh = q.reshape(B, S, NHEADS, hd).transpose(0, 2, 1, 3) / jnp.sqrt(hd)
    kh = k.reshape(B, S, NHEADS, hd).transpose(0, 2, 1, 3)
    vh = v.reshape(B, S, NHEADS, hd).transpose(0, 2, 1, 3)
    scores = jnp.einsum("bhqd,bhkd->bhqk", qh, kh) + mask_bias[:, None, :, :]
    probs = jax.nn.softmax(scores, axis=-1)
    attn = jnp.einsum("bhqk,bhkd->bhqd", probs, vh).transpose(0, 2, 1, 3)
    attn = attn.reshape(B, S, D_MODEL) @ p["wout_t"] + p["bout"]

    def ln(x, g, b):
        mu = jnp.mean(x, axis=-1, keepdims=True)
        var = jnp.mean((x - mu) ** 2, axis=-1, keepdims=True)
        return (x - mu) / jnp.sqrt(var + LN_EPS) * g + b

    src = ln(x_bsd + attn, p["ln1_g"], p["ln1_b"])
    ff = jnp.maximum(src @ p["w1_t"] + p["b1"], 0.0) @ p["w2_t"] + p["b2"]
    return ln(src + ff, p["ln2_g"], p["ln2_b"])


def ref_encoder(x_sbd, layer_params, x_mask=None):
    x_bsd = jnp.transpose(x_sbd, (1, 0, 2))
    B, S, _ = x_bsd.shape
    mask_bias = jnp.zeros((B, 1, S), jnp.float32) if x_mask is None else \
        jnp.where(x_mask, NEG_INF, 0.0).astype(jnp.float32).reshape(B, 1, S)
    for p in layer_params:
        x_bsd = ref_layer(x_bsd, mask_bias, p)
    return jnp.transpose(x_bsd, (1, 0, 2))


# ----------------------------- main ------------------------------------------
if __name__ == "__main__":
    key = jax.random.PRNGKey(0)
    kx, *kls = jax.random.split(key, 1 + NUM_LAYERS)

    # PyTorch layout: (seq, batch, d_model)
    x = jax.random.normal(kx, (SEQ, BATCH, D_MODEL), jnp.float32)
    layer_params = [init_layer_params(k) for k in kls]

    # --- no key-padding mask -------------------------------------------------
    out = self_attention_encoder(x, layer_params, x_mask=None)
    out = jax.block_until_ready(out)
    ref = ref_encoder(x, layer_params, x_mask=None)
    assert out.shape == (SEQ, BATCH, D_MODEL)
    assert jnp.allclose(out, ref, atol=1e-4, rtol=1e-4), "mismatch (no mask)"

    # --- with key-padding mask (True = padded key position) -------------------
    lengths = jnp.array([SEQ, 5])
    x_mask = jnp.arange(SEQ)[None, :] >= lengths[:, None]     # (B, S) bool
    out_m = self_attention_encoder(x, layer_params, x_mask=x_mask)
    out_m = jax.block_until_ready(out_m)
    ref_m = ref_encoder(x, layer_params, x_mask=x_mask)
    assert jnp.allclose(out_m, ref_m, atol=1e-4, rtol=1e-4), "mismatch (masked)"

    print("KERNEL_OK")
</pallas_src>

<mosaic_0001>
module attributes {stable_mosaic.version = 11 : i64} {
  func.func @encoder_kernel(%arg0: memref<16x32xf32, #tpu.memory_space<vmem>>, %arg1: memref<16x16xf32, #tpu.memory_space<vmem>>, %arg2: memref<2x32x96xf32, #tpu.memory_space<vmem>>, %arg3: memref<2x1x96xf32, #tpu.memory_space<vmem>>, %arg4: memref<2x32x32xf32, #tpu.memory_space<vmem>>, %arg5: memref<2x1x32xf32, #tpu.memory_space<vmem>>, %arg6: memref<2x1x32xf32, #tpu.memory_space<vmem>>, %arg7: memref<2x1x32xf32, #tpu.memory_space<vmem>>, %arg8: memref<2x32x64xf32, #tpu.memory_space<vmem>>, %arg9: memref<2x1x64xf32, #tpu.memory_space<vmem>>, %arg10: memref<2x64x32xf32, #tpu.memory_space<vmem>>, %arg11: memref<2x1x32xf32, #tpu.memory_space<vmem>>, %arg12: memref<2x1x32xf32, #tpu.memory_space<vmem>>, %arg13: memref<2x1x32xf32, #tpu.memory_space<vmem>>, %arg14: memref<16x32xf32, #tpu.memory_space<vmem>>) attributes {dimension_semantics = [], scalar_prefetch = 0 : i64, scratch_operands = 0 : i64, tpu.core_type = #tpu.core_type<tc>} {
    %c0 = arith.constant 0 : index
    %c0_0 = arith.constant 0 : index
    %0 = vector.load %arg0[%c0, %c0_0] : memref<16x32xf32, #tpu.memory_space<vmem>>, vector<16x32xf32>
    %c0_1 = arith.constant 0 : index
    %c0_2 = arith.constant 0 : index
    %1 = vector.load %arg1[%c0_1, %c0_2] : memref<16x16xf32, #tpu.memory_space<vmem>>, vector<16x16xf32>
    %c0_3 = arith.constant 0 : index
    %c0_4 = arith.constant 0 : index
    %c0_5 = arith.constant 0 : index
    %2 = vector.load %arg2[%c0_3, %c0_4, %c0_5] : memref<2x32x96xf32, #tpu.memory_space<vmem>>, vector<1x32x96xf32>
    %3 = vector.shape_cast %2 : vector<1x32x96xf32> to vector<32x96xf32>
    %cst = arith.constant dense<0.000000e+00> : vector<16x96xf32>
    %4 = tpu.matmul %0, %3, %cst {dimension_numbers = #tpu.dot_dimension_numbers<[1], [0], [0], [1], [0, 0, 1, 1], [], []>} : vector<16x32xf32>, vector<32x96xf32>, vector<16x96xf32> -> vector<16x96xf32>
    %c0_6 = arith.constant 0 : index
    %c0_7 = arith.constant 0 : index
    %c0_8 = arith.constant 0 : index
    %5 = vector.load %arg3[%c0_6, %c0_7, %c0_8] : memref<2x1x96xf32, #tpu.memory_space<vmem>>, vector<1x1x96xf32>
    %6 = vector.shape_cast %5 : vector<1x1x96xf32> to vector<1x96xf32>
    %7 = vector.broadcast %6 : vector<1x96xf32> to vector<16x96xf32>
    %8 = arith.addf %4, %7 : vector<16x96xf32>
    %c0_9 = arith.constant 0 : index
    %c0_10 = arith.constant 0 : index
    %c0_11 = arith.constant 0 : index
    %9 = vector.load %arg4[%c0_9, %c0_10, %c0_11] : memref<2x32x32xf32, #tpu.memory_space<vmem>>, vector<1x32x32xf32>
    %10 = vector.shape_cast %9 : vector<1x32x32xf32> to vector<32x32xf32>
    %cst_12 = arith.constant 0.000000e+00 : f32
    %11 = vector.broadcast %cst_12 : f32 to vector<16x32xf32>
    %12 = vector.extract_strided_slice %8 {offsets = [0, 0], sizes = [16, 8], strides = [1, 1]} : vector<16x96xf32> to vector<16x8xf32>
    %13 = vector.extract_strided_slice %8 {offsets = [0, 32], sizes = [16, 8], strides = [1, 1]} : vector<16x96xf32> to vector<16x8xf32>
    %14 = vector.extract_strided_slice %8 {offsets = [0, 64], sizes = [16, 8], strides = [1, 1]} : vector<16x96xf32> to vector<16x8xf32>
    %cst_13 = arith.constant dense<0.000000e+00> : vector<16x16xf32>
    %15 = tpu.matmul %12, %13, %cst_13 {dimension_numbers = #tpu.dot_dimension_numbers<[1], [1], [0], [0], [0, 0, 1, 0], [], []>} : vector<16x8xf32>, vector<16x8xf32>, vector<16x16xf32> -> vector<16x16xf32>
    %16 = arith.addf %15, %1 : vector<16x16xf32>
    %cst_14 = arith.constant dense<0xFF800000> : vector<16xf32>
    %17 = vector.multi_reduction <maximumf>, %16, %cst_14 [1] : vector<16x16xf32> to vector<16xf32>
    %18 = vector.shape_cast %17 : vector<16xf32> to vector<16x1xf32>
    %19 = vector.broadcast %18 : vector<16x1xf32> to vector<16x16xf32>
    %20 = arith.subf %16, %19 : vector<16x16xf32>
    %21 = math.exp %20 : vector<16x16xf32>
    %cst_15 = arith.constant dense<0.000000e+00> : vector<16xf32>
    %22 = vector.multi_reduction <add>, %21, %cst_15 [1] : vector<16x16xf32> to vector<16xf32>
    %23 = vector.shape_cast %22 : vector<16xf32> to vector<16x1xf32>
    %cst_16 = arith.constant dense<0.000000e+00> : vector<16x8xf32>
    %24 = tpu.matmul %21, %14, %cst_16 {dimension_numbers = #tpu.dot_dimension_numbers<[1], [0], [0], [1], [0, 0, 1, 1], [], []>} : vector<16x16xf32>, vector<16x8xf32>, vector<16x8xf32> -> vector<16x8xf32>
    %25 = vector.broadcast %23 : vector<16x1xf32> to vector<16x8xf32>
    %26 = arith.divf %24, %25 : vector<16x8xf32>
    %27 = vector.extract_strided_slice %10 {offsets = [0, 0], sizes = [8, 32], strides = [1, 1]} : vector<32x32xf32> to vector<8x32xf32>
    %cst_17 = arith.constant dense<0.000000e+00> : vector<16x32xf32>
    %28 = tpu.matmul %26, %27, %cst_17 {dimension_numbers = #tpu.dot_dimension_numbers<[1], [0], [0], [1], [0, 0, 1, 1], [], []>} : vector<16x8xf32>, vector<8x32xf32>, vector<16x32xf32> -> vector<16x32xf32>
    %29 = arith.addf %11, %28 : vector<16x32xf32>
    %30 = vector.extract_strided_slice %8 {offsets = [0, 8], sizes = [16, 8], strides = [1, 1]} : vector<16x96xf32> to vector<16x8xf32>
    %31 = vector.extract_strided_slice %8 {offsets = [0, 40], sizes = [16, 8], strides = [1, 1]} : vector<16x96xf32> to vector<16x8xf32>
    %32 = vector.extract_strided_slice %8 {offsets = [0, 72], sizes = [16, 8], strides = [1, 1]} : vector<16x96xf32> to vector<16x8xf32>
    %cst_18 = arith.constant dense<0.000000e+00> : vector<16x16xf32>
    %33 = tpu.matmul %30, %31, %cst_18 {dimension_numbers = #tpu.dot_dimension_numbers<[1], [1], [0], [0], [0, 0, 1, 0], [], []>} : vector<16x8xf32>, vector<16x8xf32>, vector<16x16xf32> -> vector<16x16xf32>
    %34 = arith.addf %33, %1 : vector<16x16xf32>
    %cst_19 = arith.constant dense<0xFF800000> : vector<16xf32>
    %35 = vector.multi_reduction <maximumf>, %34, %cst_19 [1] : vector<16x16xf32> to vector<16xf32>
    %36 = vector.shape_cast %35 : vector<16xf32> to vector<16x1xf32>
    %37 = vector.broadcast %36 : vector<16x1xf32> to vector<16x16xf32>
    %38 = arith.subf %34, %37 : vector<16x16xf32>
    %39 = math.exp %38 : vector<16x16xf32>
    %cst_20 = arith.constant dense<0.000000e+00> : vector<16xf32>
    %40 = vector.multi_reduction <add>, %39, %cst_20 [1] : vector<16x16xf32> to vector<16xf32>
    %41 = vector.shape_cast %40 : vector<16xf32> to vector<16x1xf32>
    %cst_21 = arith.constant dense<0.000000e+00> : vector<16x8xf32>
    %42 = tpu.matmul %39, %32, %cst_21 {dimension_numbers = #tpu.dot_dimension_numbers<[1], [0], [0], [1], [0, 0, 1, 1], [], []>} : vector<16x16xf32>, vector<16x8xf32>, vector<16x8xf32> -> vector<16x8xf32>
    %43 = vector.broadcast %41 : vector<16x1xf32> to vector<16x8xf32>
    %44 = arith.divf %42, %43 : vector<16x8xf32>
    %45 = vector.extract_strided_slice %10 {offsets = [8, 0], sizes = [8, 32], strides = [1, 1]} : vector<32x32xf32> to vector<8x32xf32>
    %cst_22 = arith.constant dense<0.000000e+00> : vector<16x32xf32>
    %46 = tpu.matmul %44, %45, %cst_22 {dimension_numbers = #tpu.dot_dimension_numbers<[1], [0], [0], [1], [0, 0, 1, 1], [], []>} : vector<16x8xf32>, vector<8x32xf32>, vector<16x32xf32> -> vector<16x32xf32>
    %47 = arith.addf %29, %46 : vector<16x32xf32>
    %48 = vector.extract_strided_slice %8 {offsets = [0, 16], sizes = [16, 8], strides = [1, 1]} : vector<16x96xf32> to vector<16x8xf32>
    %49 = vector.extract_strided_slice %8 {offsets = [0, 48], sizes = [16, 8], strides = [1, 1]} : vector<16x96xf32> to vector<16x8xf32>
    %50 = vector.extract_strided_slice %8 {offsets = [0, 80], sizes = [16, 8], strides = [1, 1]} : vector<16x96xf32> to vector<16x8xf32>
    %cst_23 = arith.constant dense<0.000000e+00> : vector<16x16xf32>
    %51 = tpu.matmul %48, %49, %cst_23 {dimension_numbers = #tpu.dot_dimension_numbers<[1], [1], [0], [0], [0, 0, 1, 0], [], []>} : vector<16x8xf32>, vector<16x8xf32>, vector<16x16xf32> -> vector<16x16xf32>
    %52 = arith.addf %51, %1 : vector<16x16xf32>
    %cst_24 = arith.constant dense<0xFF800000> : vector<16xf32>
    %53 = vector.multi_reduction <maximumf>, %52, %cst_24 [1] : vector<16x16xf32> to vector<16xf32>
    %54 = vector.shape_cast %53 : vector<16xf32> to vector<16x1xf32>
    %55 = vector.broadcast %54 : vector<16x1xf32> to vector<16x16xf32>
    %56 = arith.subf %52, %55 : vector<16x16xf32>
    %57 = math.exp %56 : vector<16x16xf32>
    %cst_25 = arith.constant dense<0.000000e+00> : vector<16xf32>
    %58 = vector.multi_reduction <add>, %57, %cst_25 [1] : vector<16x16xf32> to vector<16xf32>
    %59 = vector.shape_cast %58 : vector<16xf32> to vector<16x1xf32>
    %cst_26 = arith.constant dense<0.000000e+00> : vector<16x8xf32>
    %60 = tpu.matmul %57, %50, %cst_26 {dimension_numbers = #tpu.dot_dimension_numbers<[1], [0], [0], [1], [0, 0, 1, 1], [], []>} : vector<16x16xf32>, vector<16x8xf32>, vector<16x8xf32> -> vector<16x8xf32>
    %61 = vector.broadcast %59 : vector<16x1xf32> to vector<16x8xf32>
    %62 = arith.divf %60, %61 : vector<16x8xf32>
    %63 = vector.extract_strided_slice %10 {offsets = [16, 0], sizes = [8, 32], strides = [1, 1]} : vector<32x32xf32> to vector<8x32xf32>
    %cst_27 = arith.constant dense<0.000000e+00> : vector<16x32xf32>
    %64 = tpu.matmul %62, %63, %cst_27 {dimension_numbers = #tpu.dot_dimension_numbers<[1], [0], [0], [1], [0, 0, 1, 1], [], []>} : vector<16x8xf32>, vector<8x32xf32>, vector<16x32xf32> -> vector<16x32xf32>
    %65 = arith.addf %47, %64 : vector<16x32xf32>
    %66 = vector.extract_strided_slice %8 {offsets = [0, 24], sizes = [16, 8], strides = [1, 1]} : vector<16x96xf32> to vector<16x8xf32>
    %67 = vector.extract_strided_slice %8 {offsets = [0, 56], sizes = [16, 8], strides = [1, 1]} : vector<16x96xf32> to vector<16x8xf32>
    %68 = vector.extract_strided_slice %8 {offsets = [0, 88], sizes = [16, 8], strides = [1, 1]} : vector<16x96xf32> to vector<16x8xf32>
    %cst_28 = arith.constant dense<0.000000e+00> : vector<16x16xf32>
    %69 = tpu.matmul %66, %67, %cst_28 {dimension_numbers = #tpu.dot_dimension_numbers<[1], [1], [0], [0], [0, 0, 1, 0], [], []>} : vector<16x8xf32>, vector<16x8xf32>, vector<16x16xf32> -> vector<16x16xf32>
    %70 = arith.addf %69, %1 : vector<16x16xf32>
    %cst_29 = arith.constant dense<0xFF800000> : vector<16xf32>
    %71 = vector.multi_reduction <maximumf>, %70, %cst_29 [1] : vector<16x16xf32> to vector<16xf32>
    %72 = vector.shape_cast %71 : vector<16xf32> to vector<16x1xf32>
    %73 = vector.broadcast %72 : vector<16x1xf32> to vector<16x16xf32>
    %74 = arith.subf %70, %73 : vector<16x16xf32>
    %75 = math.exp %74 : vector<16x16xf32>
    %cst_30 = arith.constant dense<0.000000e+00> : vector<16xf32>
    %76 = vector.multi_reduction <add>, %75, %cst_30 [1] : vector<16x16xf32> to vector<16xf32>
    %77 = vector.shape_cast %76 : vector<16xf32> to vector<16x1xf32>
    %cst_31 = arith.constant dense<0.000000e+00> : vector<16x8xf32>
    %78 = tpu.matmul %75, %68, %cst_31 {dimension_numbers = #tpu.dot_dimension_numbers<[1], [0], [0], [1], [0, 0, 1, 1], [], []>} : vector<16x16xf32>, vector<16x8xf32>, vector<16x8xf32> -> vector<16x8xf32>
    %79 = vector.broadcast %77 : vector<16x1xf32> to vector<16x8xf32>
    %80 = arith.divf %78, %79 : vector<16x8xf32>
    %81 = vector.extract_strided_slice %10 {offsets = [24, 0], sizes = [8, 32], strides = [1, 1]} : vector<32x32xf32> to vector<8x32xf32>
    %cst_32 = arith.constant dense<0.000000e+00> : vector<16x32xf32>
    %82 = tpu.matmul %80, %81, %cst_32 {dimension_numbers = #tpu.dot_dimension_numbers<[1], [0], [0], [1], [0, 0, 1, 1], [], []>} : vector<16x8xf32>, vector<8x32xf32>, vector<16x32xf32> -> vector<16x32xf32>
    %83 = arith.addf %65, %82 : vector<16x32xf32>
    %c0_33 = arith.constant 0 : index
    %c0_34 = arith.constant 0 : index
    %c0_35 = arith.constant 0 : index
    %84 = vector.load %arg5[%c0_33, %c0_34, %c0_35] : memref<2x1x32xf32, #tpu.memory_space<vmem>>, vector<1x1x32xf32>
    %85 = vector.shape_cast %84 : vector<1x1x32xf32> to vector<1x32xf32>
    %86 = vector.broadcast %85 : vector<1x32xf32> to vector<16x32xf32>
    %87 = arith.addf %83, %86 : vector<16x32xf32>
    %88 = arith.addf %0, %87 : vector<16x32xf32>
    %c0_36 = arith.constant 0 : index
    %c0_37 = arith.constant 0 : index
    %c0_38 = arith.constant 0 : index
    %89 = vector.load %arg6[%c0_36, %c0_37, %c0_38] : memref<2x1x32xf32, #tpu.memory_space<vmem>>, vector<1x1x32xf32>
    %90 = vector.shape_cast %89 : vector<1x1x32xf32> to vector<1x32xf32>
    %c0_39 = arith.constant 0 : index
    %c0_40 = arith.constant 0 : index
    %c0_41 = arith.constant 0 : index
    %91 = vector.load %arg7[%c0_39, %c0_40, %c0_41] : memref<2x1x32xf32, #tpu.memory_space<vmem>>, vector<1x1x32xf32>
    %92 = vector.shape_cast %91 : vector<1x1x32xf32> to vector<1x32xf32>
    %cst_42 = arith.constant dense<0.000000e+00> : vector<16xf32>
    %93 = vector.multi_reduction <add>, %88, %cst_42 [1] : vector<16x32xf32> to vector<16xf32>
    %94 = vector.shape_cast %93 : vector<16xf32> to vector<16x1xf32>
    %cst_43 = arith.constant 3.200000e+01 : f32
    %95 = vector.broadcast %cst_43 : f32 to vector<16x1xf32>
    %96 = arith.divf %94, %95 : vector<16x1xf32>
    %97 = vector.broadcast %96 : vector<16x1xf32> to vector<16x32xf32>
    %98 = arith.subf %88, %97 : vector<16x32xf32>
    %99 = arith.mulf %98, %98 : vector<16x32xf32>
    %cst_44 = arith.constant dense<0.000000e+00> : vector<16xf32>
    %100 = vector.multi_reduction <add>, %99, %cst_44 [1] : vector<16x32xf32> to vector<16xf32>
    %101 = vector.shape_cast %100 : vector<16xf32> to vector<16x1xf32>
    %cst_45 = arith.constant 3.200000e+01 : f32
    %102 = vector.broadcast %cst_45 : f32 to vector<16x1xf32>
    %103 = arith.divf %101, %102 : vector<16x1xf32>
    %104 = vector.broadcast %96 : vector<16x1xf32> to vector<16x32xf32>
    %105 = arith.subf %88, %104 : vector<16x32xf32>
    %cst_46 = arith.constant 9.99999974E-6 : f32
    %106 = vector.broadcast %cst_46 : f32 to vector<16x1xf32>
    %107 = arith.addf %103, %106 : vector<16x1xf32>
    %108 = math.rsqrt %107 : vector<16x1xf32>
    %109 = vector.broadcast %108 : vector<16x1xf32> to vector<16x32xf32>
    %110 = arith.mulf %105, %109 : vector<16x32xf32>
    %111 = vector.broadcast %90 : vector<1x32xf32> to vector<16x32xf32>
    %112 = arith.mulf %110, %111 : vector<16x32xf32>
    %113 = vector.broadcast %92 : vector<1x32xf32> to vector<16x32xf32>
    %114 = arith.addf %112, %113 : vector<16x32xf32>
    %c0_47 = arith.constant 0 : index
    %c0_48 = arith.constant 0 : index
    %c0_49 = arith.constant 0 : index
    %115 = vector.load %arg8[%c0_47, %c0_48, %c0_49] : memref<2x32x64xf32, #tpu.memory_space<vmem>>, vector<1x32x64xf32>
    %116 = vector.shape_cast %115 : vector<1x32x64xf32> to vector<32x64xf32>
    %cst_50 = arith.constant dense<0.000000e+00> : vector<16x64xf32>
    %117 = tpu.matmul %114, %116, %cst_50 {dimension_numbers = #tpu.dot_dimension_numbers<[1], [0], [0], [1], [0, 0, 1, 1], [], []>} : vector<16x32xf32>, vector<32x64xf32>, vector<16x64xf32> -> vector<16x64xf32>
    %c0_51 = arith.constant 0 : index
    %c0_52 = arith.constant 0 : index
    %c0_53 = arith.constant 0 : index
    %118 = vector.load %arg9[%c0_51, %c0_52, %c0_53] : memref<2x1x64xf32, #tpu.memory_space<vmem>>, vector<1x1x64xf32>
    %119 = vector.shape_cast %118 : vector<1x1x64xf32> to vector<1x64xf32>
    %120 = vector.broadcast %119 : vector<1x64xf32> to vector<16x64xf32>
    %121 = arith.addf %117, %120 : vector<16x64xf32>
    %cst_54 = arith.constant 0.000000e+00 : f32
    %122 = vector.broadcast %cst_54 : f32 to vector<16x64xf32>
    %123 = arith.maximumf %121, %122 : vector<16x64xf32>
    %c0_55 = arith.constant 0 : index
    %c0_56 = arith.constant 0 : index
    %c0_57 = arith.constant 0 : index
    %124 = vector.load %arg10[%c0_55, %c0_56, %c0_57] : memref<2x64x32xf32, #tpu.memory_space<vmem>>, vector<1x64x32xf32>
    %125 = vector.shape_cast %124 : vector<1x64x32xf32> to vector<64x32xf32>
    %cst_58 = arith.constant dense<0.000000e+00> : vector<16x32xf32>
    %126 = tpu.matmul %123, %125, %cst_58 {dimension_numbers = #tpu.dot_dimension_numbers<[1], [0], [0], [1], [0, 0, 1, 1], [], []>} : vector<16x64xf32>, vector<64x32xf32>, vector<16x32xf32> -> vector<16x32xf32>
    %c0_59 = arith.constant 0 : index
    %c0_60 = arith.constant 0 : index
    %c0_61 = arith.constant 0 : index
    %127 = vector.load %arg11[%c0_59, %c0_60, %c0_61] : memref<2x1x32xf32, #tpu.memory_space<vmem>>, vector<1x1x32xf32>
    %128 = vector.shape_cast %127 : vector<1x1x32xf32> to vector<1x32xf32>
    %129 = vector.broadcast %128 : vector<1x32xf32> to vector<16x32xf32>
    %130 = arith.addf %126, %129 : vector<16x32xf32>
    %131 = arith.addf %114, %130 : vector<16x32xf32>
    %c0_62 = arith.constant 0 : index
    %c0_63 = arith.constant 0 : index
    %c0_64 = arith.constant 0 : index
    %132 = vector.load %arg12[%c0_62, %c0_63, %c0_64] : memref<2x1x32xf32, #tpu.memory_space<vmem>>, vector<1x1x32xf32>
    %133 = vector.shape_cast %132 : vector<1x1x32xf32> to vector<1x32xf32>
    %c0_65 = arith.constant 0 : index
    %c0_66 = arith.constant 0 : index
    %c0_67 = arith.constant 0 : index
    %134 = vector.load %arg13[%c0_65, %c0_66, %c0_67] : memref<2x1x32xf32, #tpu.memory_space<vmem>>, vector<1x1x32xf32>
    %135 = vector.shape_cast %134 : vector<1x1x32xf32> to vector<1x32xf32>
    %cst_68 = arith.constant dense<0.000000e+00> : vector<16xf32>
    %136 = vector.multi_reduction <add>, %131, %cst_68 [1] : vector<16x32xf32> to vector<16xf32>
    %137 = vector.shape_cast %136 : vector<16xf32> to vector<16x1xf32>
    %cst_69 = arith.constant 3.200000e+01 : f32
    %138 = vector.broadcast %cst_69 : f32 to vector<16x1xf32>
    %139 = arith.divf %137, %138 : vector<16x1xf32>
    %140 = vector.broadcast %139 : vector<16x1xf32> to vector<16x32xf32>
    %141 = arith.subf %131, %140 : vector<16x32xf32>
    %142 = arith.mulf %141, %141 : vector<16x32xf32>
    %cst_70 = arith.constant dense<0.000000e+00> : vector<16xf32>
    %143 = vector.multi_reduction <add>, %142, %cst_70 [1] : vector<16x32xf32> to vector<16xf32>
    %144 = vector.shape_cast %143 : vector<16xf32> to vector<16x1xf32>
    %cst_71 = arith.constant 3.200000e+01 : f32
    %145 = vector.broadcast %cst_71 : f32 to vector<16x1xf32>
    %146 = arith.divf %144, %145 : vector<16x1xf32>
    %147 = vector.broadcast %139 : vector<16x1xf32> to vector<16x32xf32>
    %148 = arith.subf %131, %147 : vector<16x32xf32>
    %cst_72 = arith.constant 9.99999974E-6 : f32
    %149 = vector.broadcast %cst_72 : f32 to vector<16x1xf32>
    %150 = arith.addf %146, %149 : vector<16x1xf32>
    %151 = math.rsqrt %150 : vector<16x1xf32>
    %152 = vector.broadcast %151 : vector<16x1xf32> to vector<16x32xf32>
    %153 = arith.mulf %148, %152 : vector<16x32xf32>
    %154 = vector.broadcast %133 : vector<1x32xf32> to vector<16x32xf32>
    %155 = arith.mulf %153, %154 : vector<16x32xf32>
    %156 = vector.broadcast %135 : vector<1x32xf32> to vector<16x32xf32>
    %157 = arith.addf %155, %156 : vector<16x32xf32>
    %c1 = arith.constant 1 : index
    %c0_73 = arith.constant 0 : index
    %c0_74 = arith.constant 0 : index
    %158 = vector.load %arg2[%c1, %c0_73, %c0_74] : memref<2x32x96xf32, #tpu.memory_space<vmem>>, vector<1x32x96xf32>
    %159 = vector.shape_cast %158 : vector<1x32x96xf32> to vector<32x96xf32>
    %cst_75 = arith.constant dense<0.000000e+00> : vector<16x96xf32>
    %160 = tpu.matmul %157, %159, %cst_75 {dimension_numbers = #tpu.dot_dimension_numbers<[1], [0], [0], [1], [0, 0, 1, 1], [], []>} : vector<16x32xf32>, vector<32x96xf32>, vector<16x96xf32> -> vector<16x96xf32>
    %c1_76 = arith.constant 1 : index
    %c0_77 = arith.constant 0 : index
    %c0_78 = arith.constant 0 : index
    %161 = vector.load %arg3[%c1_76, %c0_77, %c0_78] : memref<2x1x96xf32, #tpu.memory_space<vmem>>, vector<1x1x96xf32>
    %162 = vector.shape_cast %161 : vector<1x1x96xf32> to vector<1x96xf32>
    %163 = vector.broadcast %162 : vector<1x96xf32> to vector<16x96xf32>
    %164 = arith.addf %160, %163 : vector<16x96xf32>
    %c1_79 = arith.constant 1 : index
    %c0_80 = arith.constant 0 : index
    %c0_81 = arith.constant 0 : index
    %165 = vector.load %arg4[%c1_79, %c0_80, %c0_81] : memref<2x32x32xf32, #tpu.memory_space<vmem>>, vector<1x32x32xf32>
    %166 = vector.shape_cast %165 : vector<1x32x32xf32> to vector<32x32xf32>
    %cst_82 = arith.constant 0.000000e+00 : f32
    %167 = vector.broadcast %cst_82 : f32 to vector<16x32xf32>
    %168 = vector.extract_strided_slice %164 {offsets = [0, 0], sizes = [16, 8], strides = [1, 1]} : vector<16x96xf32> to vector<16x8xf32>
    %169 = vector.extract_strided_slice %164 {offsets = [0, 32], sizes = [16, 8], strides = [1, 1]} : vector<16x96xf32> to vector<16x8xf32>
    %170 = vector.extract_strided_slice %164 {offsets = [0, 64], sizes = [16, 8], strides = [1, 1]} : vector<16x96xf32> to vector<16x8xf32>
    %cst_83 = arith.constant dense<0.000000e+00> : vector<16x16xf32>
    %171 = tpu.matmul %168, %169, %cst_83 {dimension_numbers = #tpu.dot_dimension_numbers<[1], [1], [0], [0], [0, 0, 1, 0], [], []>} : vector<16x8xf32>, vector<16x8xf32>, vector<16x16xf32> -> vector<16x16xf32>
    %172 = arith.addf %171, %1 : vector<16x16xf32>
    %cst_84 = arith.constant dense<0xFF800000> : vector<16xf32>
    %173 = vector.multi_reduction <maximumf>, %172, %cst_84 [1] : vector<16x16xf32> to vector<16xf32>
    %174 = vector.shape_cast %173 : vector<16xf32> to vector<16x1xf32>
    %175 = vector.broadcast %174 : vector<16x1xf32> to vector<16x16xf32>
    %176 = arith.subf %172, %175 : vector<16x16xf32>
    %177 = math.exp %176 : vector<16x16xf32>
    %cst_85 = arith.constant dense<0.000000e+00> : vector<16xf32>
    %178 = vector.multi_reduction <add>, %177, %cst_85 [1] : vector<16x16xf32> to vector<16xf32>
    %179 = vector.shape_cast %178 : vector<16xf32> to vector<16x1xf32>
    %cst_86 = arith.constant dense<0.000000e+00> : vector<16x8xf32>
    %180 = tpu.matmul %177, %170, %cst_86 {dimension_numbers = #tpu.dot_dimension_numbers<[1], [0], [0], [1], [0, 0, 1, 1], [], []>} : vector<16x16xf32>, vector<16x8xf32>, vector<16x8xf32> -> vector<16x8xf32>
    %181 = vector.broadcast %179 : vector<16x1xf32> to vector<16x8xf32>
    %182 = arith.divf %180, %181 : vector<16x8xf32>
    %183 = vector.extract_strided_slice %166 {offsets = [0, 0], sizes = [8, 32], strides = [1, 1]} : vector<32x32xf32> to vector<8x32xf32>
    %cst_87 = arith.constant dense<0.000000e+00> : vector<16x32xf32>
    %184 = tpu.matmul %182, %183, %cst_87 {dimension_numbers = #tpu.dot_dimension_numbers<[1], [0], [0], [1], [0, 0, 1, 1], [], []>} : vector<16x8xf32>, vector<8x32xf32>, vector<16x32xf32> -> vector<16x32xf32>
    %185 = arith.addf %167, %184 : vector<16x32xf32>
    %186 = vector.extract_strided_slice %164 {offsets = [0, 8], sizes = [16, 8], strides = [1, 1]} : vector<16x96xf32> to vector<16x8xf32>
    %187 = vector.extract_strided_slice %164 {offsets = [0, 40], sizes = [16, 8], strides = [1, 1]} : vector<16x96xf32> to vector<16x8xf32>
    %188 = vector.extract_strided_slice %164 {offsets = [0, 72], sizes = [16, 8], strides = [1, 1]} : vector<16x96xf32> to vector<16x8xf32>
    %cst_88 = arith.constant dense<0.000000e+00> : vector<16x16xf32>
    %189 = tpu.matmul %186, %187, %cst_88 {dimension_numbers = #tpu.dot_dimension_numbers<[1], [1], [0], [0], [0, 0, 1, 0], [], []>} : vector<16x8xf32>, vector<16x8xf32>, vector<16x16xf32> -> vector<16x16xf32>
    %190 = arith.addf %189, %1 : vector<16x16xf32>
    %cst_89 = arith.constant dense<0xFF800000> : vector<16xf32>
    %191 = vector.multi_reduction <maximumf>, %190, %cst_89 [1] : vector<16x16xf32> to vector<16xf32>
    %192 = vector.shape_cast %191 : vector<16xf32> to vector<16x1xf32>
    %193 = vector.broadcast %192 : vector<16x1xf32> to vector<16x16xf32>
    %194 = arith.subf %190, %193 : vector<16x16xf32>
    %195 = math.exp %194 : vector<16x16xf32>
    %cst_90 = arith.constant dense<0.000000e+00> : vector<16xf32>
    %196 = vector.multi_reduction <add>, %195, %cst_90 [1] : vector<16x16xf32> to vector<16xf32>
    %197 = vector.shape_cast %196 : vector<16xf32> to vector<16x1xf32>
    %cst_91 = arith.constant dense<0.000000e+00> : vector<16x8xf32>
    %198 = tpu.matmul %195, %188, %cst_91 {dimension_numbers = #tpu.dot_dimension_numbers<[1], [0], [0], [1], [0, 0, 1, 1], [], []>} : vector<16x16xf32>, vector<16x8xf32>, vector<16x8xf32> -> vector<16x8xf32>
    %199 = vector.broadcast %197 : vector<16x1xf32> to vector<16x8xf32>
    %200 = arith.divf %198, %199 : vector<16x8xf32>
    %201 = vector.extract_strided_slice %166 {offsets = [8, 0], sizes = [8, 32], strides = [1, 1]} : vector<32x32xf32> to vector<8x32xf32>
    %cst_92 = arith.constant dense<0.000000e+00> : vector<16x32xf32>
    %202 = tpu.matmul %200, %201, %cst_92 {dimension_numbers = #tpu.dot_dimension_numbers<[1], [0], [0], [1], [0, 0, 1, 1], [], []>} : vector<16x8xf32>, vector<8x32xf32>, vector<16x32xf32> -> vector<16x32xf32>
    %203 = arith.addf %185, %202 : vector<16x32xf32>
    %204 = vector.extract_strided_slice %164 {offsets = [0, 16], sizes = [16, 8], strides = [1, 1]} : vector<16x96xf32> to vector<16x8xf32>
    %205 = vector.extract_strided_slice %164 {offsets = [0, 48], sizes = [16, 8], strides = [1, 1]} : vector<16x96xf32> to vector<16x8xf32>
    %206 = vector.extract_strided_slice %164 {offsets = [0, 80], sizes = [16, 8], strides = [1, 1]} : vector<16x96xf32> to vector<16x8xf32>
    %cst_93 = arith.constant dense<0.000000e+00> : vector<16x16xf32>
    %207 = tpu.matmul %204, %205, %cst_93 {dimension_numbers = #tpu.dot_dimension_numbers<[1], [1], [0], [0], [0, 0, 1, 0], [], []>} : vector<16x8xf32>, vector<16x8xf32>, vector<16x16xf32> -> vector<16x16xf32>
    %208 = arith.addf %207, %1 : vector<16x16xf32>
    %cst_94 = arith.constant dense<0xFF800000> : vector<16xf32>
    %209 = vector.multi_reduction <maximumf>, %208, %cst_94 [1] : vector<16x16xf32> to vector<16xf32>
    %210 = vector.shape_cast %209 : vector<16xf32> to vector<16x1xf32>
    %211 = vector.broadcast %210 : vector<16x1xf32> to vector<16x16xf32>
    %212 = arith.subf %208, %211 : vector<16x16xf32>
    %213 = math.exp %212 : vector<16x16xf32>
    %cst_95 = arith.constant dense<0.000000e+00> : vector<16xf32>
    %214 = vector.multi_reduction <add>, %213, %cst_95 [1] : vector<16x16xf32> to vector<16xf32>
    %215 = vector.shape_cast %214 : vector<16xf32> to vector<16x1xf32>
    %cst_96 = arith.constant dense<0.000000e+00> : vector<16x8xf32>
    %216 = tpu.matmul %213, %206, %cst_96 {dimension_numbers = #tpu.dot_dimension_numbers<[1], [0], [0], [1], [0, 0, 1, 1], [], []>} : vector<16x16xf32>, vector<16x8xf32>, vector<16x8xf32> -> vector<16x8xf32>
    %217 = vector.broadcast %215 : vector<16x1xf32> to vector<16x8xf32>
    %218 = arith.divf %216, %217 : vector<16x8xf32>
    %219 = vector.extract_strided_slice %166 {offsets = [16, 0], sizes = [8, 32], strides = [1, 1]} : vector<32x32xf32> to vector<8x32xf32>
    %cst_97 = arith.constant dense<0.000000e+00> : vector<16x32xf32>
    %220 = tpu.matmul %218, %219, %cst_97 {dimension_numbers = #tpu.dot_dimension_numbers<[1], [0], [0], [1], [0, 0, 1, 1], [], []>} : vector<16x8xf32>, vector<8x32xf32>, vector<16x32xf32> -> vector<16x32xf32>
    %221 = arith.addf %203, %220 : vector<16x32xf32>
    %222 = vector.extract_strided_slice %164 {offsets = [0, 24], sizes = [16, 8], strides = [1, 1]} : vector<16x96xf32> to vector<16x8xf32>
    %223 = vector.extract_strided_slice %164 {offsets = [0, 56], sizes = [16, 8], strides = [1, 1]} : vector<16x96xf32> to vector<16x8xf32>
    %224 = vector.extract_strided_slice %164 {offsets = [0, 88], sizes = [16, 8], strides = [1, 1]} : vector<16x96xf32> to vector<16x8xf32>
    %cst_98 = arith.constant dense<0.000000e+00> : vector<16x16xf32>
    %225 = tpu.matmul %222, %223, %cst_98 {dimension_numbers = #tpu.dot_dimension_numbers<[1], [1], [0], [0], [0, 0, 1, 0], [], []>} : vector<16x8xf32>, vector<16x8xf32>, vector<16x16xf32> -> vector<16x16xf32>
    %226 = arith.addf %225, %1 : vector<16x16xf32>
    %cst_99 = arith.constant dense<0xFF800000> : vector<16xf32>
    %227 = vector.multi_reduction <maximumf>, %226, %cst_99 [1] : vector<16x16xf32> to vector<16xf32>
    %228 = vector.shape_cast %227 : vector<16xf32> to vector<16x1xf32>
    %229 = vector.broadcast %228 : vector<16x1xf32> to vector<16x16xf32>
    %230 = arith.subf %226, %229 : vector<16x16xf32>
    %231 = math.exp %230 : vector<16x16xf32>
    %cst_100 = arith.constant dense<0.000000e+00> : vector<16xf32>
    %232 = vector.multi_reduction <add>, %231, %cst_100 [1] : vector<16x16xf32> to vector<16xf32>
    %233 = vector.shape_cast %232 : vector<16xf32> to vector<16x1xf32>
    %cst_101 = arith.constant dense<0.000000e+00> : vector<16x8xf32>
    %234 = tpu.matmul %231, %224, %cst_101 {dimension_numbers = #tpu.dot_dimension_numbers<[1], [0], [0], [1], [0, 0, 1, 1], [], []>} : vector<16x16xf32>, vector<16x8xf32>, vector<16x8xf32> -> vector<16x8xf32>
    %235 = vector.broadcast %233 : vector<16x1xf32> to vector<16x8xf32>
    %236 = arith.divf %234, %235 : vector<16x8xf32>
    %237 = vector.extract_strided_slice %166 {offsets = [24, 0], sizes = [8, 32], strides = [1, 1]} : vector<32x32xf32> to vector<8x32xf32>
    %cst_102 = arith.constant dense<0.000000e+00> : vector<16x32xf32>
    %238 = tpu.matmul %236, %237, %cst_102 {dimension_numbers = #tpu.dot_dimension_numbers<[1], [0], [0], [1], [0, 0, 1, 1], [], []>} : vector<16x8xf32>, vector<8x32xf32>, vector<16x32xf32> -> vector<16x32xf32>
    %239 = arith.addf %221, %238 : vector<16x32xf32>
    %c1_103 = arith.constant 1 : index
    %c0_104 = arith.constant 0 : index
    %c0_105 = arith.constant 0 : index
    %240 = vector.load %arg5[%c1_103, %c0_104, %c0_105] : memref<2x1x32xf32, #tpu.memory_space<vmem>>, vector<1x1x32xf32>
    %241 = vector.shape_cast %240 : vector<1x1x32xf32> to vector<1x32xf32>
    %242 = vector.broadcast %241 : vector<1x32xf32> to vector<16x32xf32>
    %243 = arith.addf %239, %242 : vector<16x32xf32>
    %244 = arith.addf %157, %243 : vector<16x32xf32>
    %c1_106 = arith.constant 1 : index
    %c0_107 = arith.constant 0 : index
    %c0_108 = arith.constant 0 : index
    %245 = vector.load %arg6[%c1_106, %c0_107, %c0_108] : memref<2x1x32xf32, #tpu.memory_space<vmem>>, vector<1x1x32xf32>
    %246 = vector.shape_cast %245 : vector<1x1x32xf32> to vector<1x32xf32>
    %c1_109 = arith.constant 1 : index
    %c0_110 = arith.constant 0 : index
    %c0_111 = arith.constant 0 : index
    %247 = vector.load %arg7[%c1_109, %c0_110, %c0_111] : memref<2x1x32xf32, #tpu.memory_space<vmem>>, vector<1x1x32xf32>
    %248 = vector.shape_cast %247 : vector<1x1x32xf32> to vector<1x32xf32>
    %cst_112 = arith.constant dense<0.000000e+00> : vector<16xf32>
    %249 = vector.multi_reduction <add>, %244, %cst_112 [1] : vector<16x32xf32> to vector<16xf32>
    %250 = vector.shape_cast %249 : vector<16xf32> to vector<16x1xf32>
    %cst_113 = arith.constant 3.200000e+01 : f32
    %251 = vector.broadcast %cst_113 : f32 to vector<16x1xf32>
    %252 = arith.divf %250, %251 : vector<16x1xf32>
    %253 = vector.broadcast %252 : vector<16x1xf32> to vector<16x32xf32>
    %254 = arith.subf %244, %253 : vector<16x32xf32>
    %255 = arith.mulf %254, %254 : vector<16x32xf32>
    %cst_114 = arith.constant dense<0.000000e+00> : vector<16xf32>
    %256 = vector.multi_reduction <add>, %255, %cst_114 [1] : vector<16x32xf32> to vector<16xf32>
    %257 = vector.shape_cast %256 : vector<16xf32> to vector<16x1xf32>
    %cst_115 = arith.constant 3.200000e+01 : f32
    %258 = vector.broadcast %cst_115 : f32 to vector<16x1xf32>
    %259 = arith.divf %257, %258 : vector<16x1xf32>
    %260 = vector.broadcast %252 : vector<16x1xf32> to vector<16x32xf32>
    %261 = arith.subf %244, %260 : vector<16x32xf32>
    %cst_116 = arith.constant 9.99999974E-6 : f32
    %262 = vector.broadcast %cst_116 : f32 to vector<16x1xf32>
    %263 = arith.addf %259, %262 : vector<16x1xf32>
    %264 = math.rsqrt %263 : vector<16x1xf32>
    %265 = vector.broadcast %264 : vector<16x1xf32> to vector<16x32xf32>
    %266 = arith.mulf %261, %265 : vector<16x32xf32>
    %267 = vector.broadcast %246 : vector<1x32xf32> to vector<16x32xf32>
    %268 = arith.mulf %266, %267 : vector<16x32xf32>
    %269 = vector.broadcast %248 : vector<1x32xf32> to vector<16x32xf32>
    %270 = arith.addf %268, %269 : vector<16x32xf32>
    %c1_117 = arith.constant 1 : index
    %c0_118 = arith.constant 0 : index
    %c0_119 = arith.constant 0 : index
    %271 = vector.load %arg8[%c1_117, %c0_118, %c0_119] : memref<2x32x64xf32, #tpu.memory_space<vmem>>, vector<1x32x64xf32>
    %272 = vector.shape_cast %271 : vector<1x32x64xf32> to vector<32x64xf32>
    %cst_120 = arith.constant dense<0.000000e+00> : vector<16x64xf32>
    %273 = tpu.matmul %270, %272, %cst_120 {dimension_numbers = #tpu.dot_dimension_numbers<[1], [0], [0], [1], [0, 0, 1, 1], [], []>} : vector<16x32xf32>, vector<32x64xf32>, vector<16x64xf32> -> vector<16x64xf32>
    %c1_121 = arith.constant 1 : index
    %c0_122 = arith.constant 0 : index
    %c0_123 = arith.constant 0 : index
    %274 = vector.load %arg9[%c1_121, %c0_122, %c0_123] : memref<2x1x64xf32, #tpu.memory_space<vmem>>, vector<1x1x64xf32>
    %275 = vector.shape_cast %274 : vector<1x1x64xf32> to vector<1x64xf32>
    %276 = vector.broadcast %275 : vector<1x64xf32> to vector<16x64xf32>
    %277 = arith.addf %273, %276 : vector<16x64xf32>
    %cst_124 = arith.constant 0.000000e+00 : f32
    %278 = vector.broadcast %cst_124 : f32 to vector<16x64xf32>
    %279 = arith.maximumf %277, %278 : vector<16x64xf32>
    %c1_125 = arith.constant 1 : index
    %c0_126 = arith.constant 0 : index
    %c0_127 = arith.constant 0 : index
    %280 = vector.load %arg10[%c1_125, %c0_126, %c0_127] : memref<2x64x32xf32, #tpu.memory_space<vmem>>, vector<1x64x32xf32>
    %281 = vector.shape_cast %280 : vector<1x64x32xf32> to vector<64x32xf32>
    %cst_128 = arith.constant dense<0.000000e+00> : vector<16x32xf32>
    %282 = tpu.matmul %279, %281, %cst_128 {dimension_numbers = #tpu.dot_dimension_numbers<[1], [0], [0], [1], [0, 0, 1, 1], [], []>} : vector<16x64xf32>, vector<64x32xf32>, vector<16x32xf32> -> vector<16x32xf32>
    %c1_129 = arith.constant 1 : index
    %c0_130 = arith.constant 0 : index
    %c0_131 = arith.constant 0 : index
    %283 = vector.load %arg11[%c1_129, %c0_130, %c0_131] : memref<2x1x32xf32, #tpu.memory_space<vmem>>, vector<1x1x32xf32>
    %284 = vector.shape_cast %283 : vector<1x1x32xf32> to vector<1x32xf32>
    %285 = vector.broadcast %284 : vector<1x32xf32> to vector<16x32xf32>
    %286 = arith.addf %282, %285 : vector<16x32xf32>
    %287 = arith.addf %270, %286 : vector<16x32xf32>
    %c1_132 = arith.constant 1 : index
    %c0_133 = arith.constant 0 : index
    %c0_134 = arith.constant 0 : index
    %288 = vector.load %arg12[%c1_132, %c0_133, %c0_134] : memref<2x1x32xf32, #tpu.memory_space<vmem>>, vector<1x1x32xf32>
    %289 = vector.shape_cast %288 : vector<1x1x32xf32> to vector<1x32xf32>
    %c1_135 = arith.constant 1 : index
    %c0_136 = arith.constant 0 : index
    %c0_137 = arith.constant 0 : index
    %290 = vector.load %arg13[%c1_135, %c0_136, %c0_137] : memref<2x1x32xf32, #tpu.memory_space<vmem>>, vector<1x1x32xf32>
    %291 = vector.shape_cast %290 : vector<1x1x32xf32> to vector<1x32xf32>
    %cst_138 = arith.constant dense<0.000000e+00> : vector<16xf32>
    %292 = vector.multi_reduction <add>, %287, %cst_138 [1] : vector<16x32xf32> to vector<16xf32>
    %293 = vector.shape_cast %292 : vector<16xf32> to vector<16x1xf32>
    %cst_139 = arith.constant 3.200000e+01 : f32
    %294 = vector.broadcast %cst_139 : f32 to vector<16x1xf32>
    %295 = arith.divf %293, %294 : vector<16x1xf32>
    %296 = vector.broadcast %295 : vector<16x1xf32> to vector<16x32xf32>
    %297 = arith.subf %287, %296 : vector<16x32xf32>
    %298 = arith.mulf %297, %297 : vector<16x32xf32>
    %cst_140 = arith.constant dense<0.000000e+00> : vector<16xf32>
    %299 = vector.multi_reduction <add>, %298, %cst_140 [1] : vector<16x32xf32> to vector<16xf32>
    %300 = vector.shape_cast %299 : vector<16xf32> to vector<16x1xf32>
    %cst_141 = arith.constant 3.200000e+01 : f32
    %301 = vector.broadcast %cst_141 : f32 to vector<16x1xf32>
    %302 = arith.divf %300, %301 : vector<16x1xf32>
    %303 = vector.broadcast %295 : vector<16x1xf32> to vector<16x32xf32>
    %304 = arith.subf %287, %303 : vector<16x32xf32>
    %cst_142 = arith.constant 9.99999974E-6 : f32
    %305 = vector.broadcast %cst_142 : f32 to vector<16x1xf32>
    %306 = arith.addf %302, %305 : vector<16x1xf32>
    %307 = math.rsqrt %306 : vector<16x1xf32>
    %308 = vector.broadcast %307 : vector<16x1xf32> to vector<16x32xf32>
    %309 = arith.mulf %304, %308 : vector<16x32xf32>
    %310 = vector.broadcast %289 : vector<1x32xf32> to vector<16x32xf32>
    %311 = arith.mulf %309, %310 : vector<16x32xf32>
    %312 = vector.broadcast %291 : vector<1x32xf32> to vector<16x32xf32>
    %313 = arith.addf %311, %312 : vector<16x32xf32>
    %c0_143 = arith.constant 0 : index
    %c0_144 = arith.constant 0 : index
    %314 = vector.load %arg14[%c0_143, %c0_144] : memref<16x32xf32, #tpu.memory_space<vmem>>, vector<16x32xf32>
    tpu.vector_store %arg14[%c0_143, %c0_144], %313 {strides = array<i32>} : memref<16x32xf32, #tpu.memory_space<vmem>>, vector<16x32xf32>,
    return
  }
}

</mosaic_0001>

<bundles_post_ra>
// kernel: _encoder_pallas.1
= control target key start
LH: loop header
LB: loop body
LE: loop exit
PB: predicated region body
PF: predicated region fallthrough
CT: control target
= control target key end

     0   :  { %19 = vsyncpa [#allocation3], 0  ;;  %s4362_s0 = inlined_call_operand.hbm [shape: f32[16,32], index: 0, kind: input, shape index: {}]   ;;  %s4363_s1 = inlined_call_operand.hbm [shape: f32[16,16], index: 1, kind: input, shape index: {}]   ;;  %s4364_s2 = inlined_call_operand.vmem [shape: f32[2,32,96], index: 2, kind: input, shape index: {}]   ;;  %s4365_s3 = inlined_call_operand.vmem [shape: f32[2,1,96], index: 3, kind: input, shape index: {}]   ;;  %s4366_s4 = inlined_call_operand.vmem [shape: f32[2,32,32], index: 4, kind: input, shape index: {}]   ;;  %s4367_s5 = inlined_call_operand.vmem [shape: f32[2,1,32], index: 5, kind: input, shape index: {}]   ;;  %s4368_s6 = inlined_call_operand.vmem [shape: f32[2,1,32], index: 6, kind: input, shape index: {}]   ;;  %s4369_s7 = inlined_call_operand.vmem [shape: f32[2,1,32], index: 7, kind: input, shape index: {}]   ;;  %s4370_s8 = inlined_call_operand.vmem [shape: f32[2,32,64], index: 8, kind: input, shape index: {}]   ;;  %s4371_s9 = inlined_call_operand.vmem [shape: f32[2,1,64], index: 9, kind: input, shape index: {}]   ;;  %s4372_s10 = inlined_call_operand.vmem [shape: f32[2,64,32], index: 10, kind: input, shape index: {}]   ;;  %s4373_s11 = inlined_call_operand.vmem [shape: f32[2,1,32], index: 11, kind: input, shape index: {}]   ;;  %s4374_s12 = inlined_call_operand.vmem [shape: f32[2,1,32], index: 12, kind: input, shape index: {}]   ;;  %s4375_s13 = inlined_call_operand.vmem [shape: f32[2,1,32], index: 13, kind: input, shape index: {}]   ;;  %s4376_s14 = inlined_call_operand.hbm [shape: f32[16,32], index: 14, kind: output, shape index: {}]  }
   0x1   :  { %20 = vsyncpa [#allocation6], 0 }
   0x2   :  { %21 = vsyncpa [#allocation4], 0  ;;  %s3793_s29 = smov [#allocation2]  }
   0x3   :  { %s27_s30 = sshll.u32 %s3793_s29, 4  ;;  %s28_s30 = int_to_ptr.vmem [resolvable:$true] %s27_s30 }
   0x4   :  { %s3735_s15 = scalar_lea.vmem %s28_s30, 256  ;;  %p3740_p1 = scmp.lt.s32.totalorder %s28_s30, %s28_s30 }
   0x5   :  { %p3736_p0 = scmp.ne.s32.totalorder %s28_s30, %s3735_s15  ;;  %p3741_p2 = scmp.lt.s32.totalorder %s3735_s15, %s3735_s15 }
   0x7   :  { %p3742_p3 = por %p3741_p2, %p3740_p1 }
   0x9   :  { %p3743_p4 = pnand %p3742_p3, %p3736_p0 }
   0xb   :  { %3746 = shalt.err (!%p3743_p4)
}
   0xc   :  { %s4377_s16 = smov 128   ;;  %s4378_s17 = smov 8  }
   0xd   :  { %33 = dma.hbm_to_vmem [thread:$0]  %s4362_s0, 256, %s28_s30, [#allocation3], %s4377_s16, %s4377_s16, %s4378_s17  }
   0xe   :  { %s3796_s20 = smov [#allocation5]  }
   0xf   :  { %s39_s21 = sshll.u32 %s3796_s20, 4  ;;  %s40_s21 = int_to_ptr.vmem [resolvable:$true] %s39_s21 }
  0x10   :  { %s3755_s22 = scalar_lea.vmem %s40_s21, 256  ;;  %p3760_p6 = scmp.lt.s32.totalorder %s40_s21, %s40_s21 }
  0x11   :  { %p3756_p5 = scmp.ne.s32.totalorder %s40_s21, %s3755_s22  ;;  %p3761_p7 = scmp.lt.s32.totalorder %s3755_s22, %s3755_s22 }
  0x13   :  { %p3762_p8 = por %p3761_p7, %p3760_p6 }
  0x15   :  { %p3763_p9 = pnand %p3762_p8, %p3756_p5 }
  0x17   :  { %3766 = shalt.err (!%p3763_p9)
}
  0x18   :  { %45 = dma.hbm_to_vmem [thread:$0]  %s4363_s1, 256, %s40_s21, [#allocation6], %s4377_s16, %s4377_s16, %s4378_s17  }
  0x19   :  { %3787 = dma.done.wait [#allocation3], 256  }
  0x1a   :  { %3788 = vsyncadd [#allocation3], 4294967040 }
  0x1b   :  { %3789 = dma.done.wait [#allocation6], 256  }
  0x1c   :  { %3790 = vsyncadd [#allocation6], 4294967040  ;;  %vm91_vm0 = vcmask 261120   ;;  %v83_v0 = vld [vmem:[%s4364_s2 + $0x18] sm:$0xff]  ;;  %v82_v1 = vld [vmem:[%s4364_s2 + $0x10] sm:$0xff]  ;;  %vm183_vm1 = vcmask 64512  }
  0x1d   :  { %3395 = vmatprep.subr.mxu0 %v83_v0  ;;  %v3902_v2 = vld [vmem:[#allocation2] sm:$0xff]  ;;  %v81_v3 = vld [vmem:[%s4364_s2 + $0x8] sm:$0xff]  ;;  %s3797_s19 = smov 88   ;;  %s3798_s20 = smov 96   ;;  %v3951_v18 = vld [vmem:[#allocation5 + $0x8] sm:$0xff]  ;;  %vm267_vm2 = vcmask 130048  }
  0x1e   :  { %3396 = vmatpush3.msra.mxu0 %v83_v0  ;;  %3403 = vmatprep.mubr.msk.f32.mxu0 %vm91_vm0, %v3902_v2  ;;  %v80_v4 = vld [vmem:[%s4364_s2] sm:$0xff]  ;;  %v3912_v5 = vld [vmem:[#allocation2 + $0x8] sm:$0xff]  ;;  %s3799_s21 = smov 120   ;;  %s3800_s22 = smov 64   ;;  %v3953_v20 = vld [vmem:[#allocation5] sm:$0xff]  ;;  %vm1470_vm3 = vcmask 523264  }
  0x1f   :  { %3397 = vmatprep.subr.mxu0 %v82_v1  ;;  %v3143_v6 = vld [vmem:[%s4365_s3] ss:$0 sm:$0xff]  ;;  %s3801_s23 = smov 56   ;;  %s3802_s24 = smov 80   ;;  %v174_v55 = vld [vmem:[%s4366_s4 + $0x8] sm:$0xff] }
  0x20   :  { %3398 = vmatpush3.msra.mxu0 %v82_v1  ;;  %s3803_s0 = smov 112   ;;  %s3804_s25 = smov 72   ;;  %v173_v56 = vld [vmem:[%s4366_s4] sm:$0xff] }
  0x21   :  { %3399 = vmatprep.subr.mxu0 %v81_v3  ;;  %s3805_s26 = smov 104   ;;  %s3806_s30 = smov 48  }
  0x22   :  { %3400 = vmatpush3.msra.mxu0 %v81_v3  ;;  %s4379_s27 = smov 40   ;;  %s3808_s29 = smov [#allocation7]  }
  0x23   :  { %3401 = vmatprep.subr.mxu0 %v80_v4  ;;  %s3130_s1 = sshll.u32 %s3808_s29, 4  ;;  %s3131_s1 = int_to_ptr.vmem [resolvable:$true] %s3130_s1 }
  0x24   :  { %3402 = vmatpush3.msra.mxu0 %v80_v4  ;;  %s3767_s16 = scalar_lea.vmem %s3131_s1, 256  ;;  %p3772_p11 = scmp.lt.s32.totalorder %s3131_s1, %s3131_s1 }
  0x25   :  { %3404 = vmatmul.mubr.msk.f32.vlgmr.msra.gmra.mxu0 %vm91_vm0, %v3912_v5  ;;  %p3768_p10 = scmp.ne.s32.totalorder %s3131_s1, %s3767_s16  ;;  %p3773_p12 = scmp.lt.s32.totalorder %s3767_s16, %s3767_s16 }
  0x27   :  { %p3774_p13 = por %p3773_p12, %p3772_p11 }
  0x29   :  { %p3775_p0 = pnand %p3774_p13, %p3768_p10 }
  0xe5   :  { %v3405_v7 = vpop.f32.mrf.mxu0 }
  0xe6   :  { %v3919_v8 = vadd.f32 %v3405_v7, %v3143_v6 }
  0xe7   :  { %v164_v9 = vpop.f32.mrf.mxu0 }
  0xe8   :  { %v3921_v10 = vadd.f32 %v3143_v6, %v164_v9  ;;  %383 = vrot.lane.b32.xlu1 %v3919_v8, %s3797_s19  ;;  %181 = vrot.lane.b32.xlu0 %v3919_v8, %s3798_s20 }
  0xea   :  { %3410 = vmatprep.mubr.msk.f32.mxu1 %vm183_vm1, %v3921_v10 }
  0xec   :  { %381 = vrot.lane.b32.xlu1 %v3921_v10, %s3797_s19  ;;  %179 = vrot.lane.b32.xlu0 %v3921_v10, %s3798_s20 }
  0xf0   :  { %379 = vrot.lane.b32.xlu1 %v3919_v8, %s3799_s21  ;;  %377 = vrot.lane.b32.xlu0 %v3921_v10, %s3799_s21 }
  0xf4   :  { %288 = vrot.lane.b32.xlu1 %v3919_v8, %s3800_s22 }
 0x15a   :  { %v384_v11 = vpop.permute.xlu1 %383  ;;  %v182_v12 = vpop.permute.xlu0 %181 }
 0x15b   :  { %3406 = vmatprep.subr.msk.mxu1 %vm183_vm1, %v182_v12 }
 0x15c   :  { %3407 = vmatpush3.xpose.msk.msra.mxu1 %vm183_vm1, %v182_v12 }
 0x15e   :  { %v382_v13 = vpop.permute.xlu1 %381  ;;  %v180_v14 = vpop.permute.xlu0 %179 }
 0x15f   :  { %3408 = vmatprep.subr.msk.mxu1 %vm183_vm1, %v180_v14 }
 0x160   :  { %3409 = vmatpush3.xpose.msk.msra.mxu1 %vm183_vm1, %v180_v14 }
 0x161   :  { %3420 = vmatprep.subr.msk.mxu1 %vm183_vm1, %v384_v11 }
 0x162   :  { %v380_v15 = vpop.permute.xlu1 %379  ;;  %v378_v16 = vpop.permute.xlu0 %377 }
 0x163   :  { %3411 = vmatmul.mubr.msk.f32.vlgmr.msra.gmra.mxu1 %vm183_vm1, %v3919_v8 }
 0x164   :  { %3421 = vmatpush3.xpose.msk.msra.mxu1 %vm183_vm1, %v384_v11  ;;  %3424 = vmatprep.mubr.msk.f32.mxu1 %vm183_vm1, %v378_v16 }
 0x165   :  { %3422 = vmatprep.subr.msk.mxu1 %vm183_vm1, %v382_v13 }
 0x166   :  { %v289_v17 = vpop.permute.xlu1 %288 }
 0x167   :  { %3413 = vmatprep.subr.mxu0 %v289_v17 }
 0x168   :  { %3414 = vmatpush3.msra.mxu0 %v289_v17  ;;  %3423 = vmatpush3.xpose.msk.msra.mxu1 %vm183_vm1, %v382_v13 }
 0x16b   :  { %3425 = vmatmul.mubr.msk.f32.vlgmr.msra.gmra.mxu1 %vm183_vm1, %v380_v15 }
 0x223   :  { %v3412_v19 = vpop.f32.mrf.mxu1 }
 0x224   :  { %v264_v21 = vadd.f32 %v3412_v19, %v3951_v18 }
 0x225   :  { %v258_v22 = vpop.f32.mrf.mxu1 }
 0x226   :  { %v259_v23 = vadd.f32 %v258_v22, %v3953_v20  ;;  %v271_v24 = vsel %vm267_vm2, %v264_v21, -inf }
 0x227   :  { %272 = vmax.xlane.f32.xlu1 %v271_v24 }
 0x228   :  { %v268_v25 = vsel %vm267_vm2, %v259_v23, -inf }
 0x229   :  { %269 = vmax.xlane.f32.xlu0 %v268_v25 }
 0x22b   :  { %v3426_v26 = vpop.f32.mrf.mxu1 }
 0x22c   :  { %v465_v27 = vadd.f32 %v3426_v26, %v3951_v18 }
 0x22d   :  { %v459_v28 = vpop.f32.mrf.mxu1 }
 0x22e   :  { %v460_v29 = vadd.f32 %v459_v28, %v3953_v20  ;;  %v471_v30 = vsel %vm267_vm2, %v465_v27, -inf }
 0x22f   :  { %472 = vmax.xlane.f32.xlu0 %v471_v30 }
 0x230   :  { %v468_v31 = vsel %vm267_vm2, %v460_v29, -inf }
 0x233   :  { %469 = vmax.xlane.f32.xlu0 %v468_v31 }
 0x238   :  { %488 = vrot.lane.b32.xlu1 %v3919_v8, %s3801_s23 }
 0x23c   :  { %486 = vrot.lane.b32.xlu1 %v3921_v10, %s3801_s23 }
 0x249   :  { %286 = vrot.lane.b32.xlu0 %v3921_v10, %s3800_s22 }
 0x2b0   :  { %v273_v32 = vpop.xlane.xlu1 %272 }
 0x2b1   :  { %v275_v33 = vsub.f32 %v264_v21, %v273_v32 }
 0x2b2   :  { %v270_v34 = vpop.xlane.xlu0 %269 }
 0x2b3   :  { %v274_v35 = vsub.f32 %v259_v23, %v270_v34  ;;  %v278_v36 = vmul.f32 1.442695, %v275_v33 }
 0x2b4   :  { %v489_v45 = vpop.permute.xlu1 %488 }
 0x2b5   :  { %v276_v37 = vmul.f32 1.442695, %v274_v35 }
 0x2b7   :  { %3645 = vpow2.f32 %v276_v37 }
 0x2b8   :  { %3647 = vpow2.f32 %v278_v36  ;;  %v473_v38 = vpop.xlane.xlu0 %472  ;;  %v487_v48 = vpop.permute.xlu1 %486 }
 0x2b9   :  { %v475_v39 = vsub.f32 %v465_v27, %v473_v38 }
 0x2bb   :  { %v478_v40 = vmul.f32 1.442695, %v475_v39 }
 0x2bc   :  { %v470_v41 = vpop.xlane.xlu0 %469 }
 0x2bd   :  { %3649 = vpow2.f32 %v478_v40  ;;  %v474_v42 = vsub.f32 %v460_v29, %v470_v41 }
 0x2bf   :  { %v476_v43 = vmul.f32 1.442695, %v474_v42 }
 0x2c0   :  { %v287_v44 = vpop.permute.xlu0 %286 }
 0x2c1   :  { %3651 = vpow2.f32 %v476_v43  ;;  %3415 = vmatprep.subr.mxu0 %v287_v44 }
 0x2c2   :  { %3416 = vmatpush3.msra.mxu0 %v287_v44 }
 0x2c3   :  { %3427 = vmatprep.subr.mxu0 %v489_v45 }
 0x2c4   :  { %v3646_v46 = vpop.eup %3645 }
 0x2c5   :  { %v3648_v47 = vpop.eup %3647  ;;  %3417 = vmatprep.mubr.msk.f32.mxu0 %vm267_vm2, %v3646_v46  ;;  %v280_v53 = vsel %vm267_vm2, %v3646_v46, 0.0 }
 0x2c6   :  { %3418 = vmatmul.mubr.msk.f32.vlgmr.msra.gmra.mxu0 %vm267_vm2, %v3648_v47  ;;  %v283_v54 = vsel %vm267_vm2, %v3648_v47, 0.0 }
 0x2c7   :  { %3428 = vmatpush3.msra.mxu0 %v489_v45 }
 0x2c8   :  { %3429 = vmatprep.subr.mxu0 %v487_v48 }
 0x2c9   :  { %3430 = vmatpush3.msra.mxu0 %v487_v48 }
 0x2ca   :  { %v3650_v49 = vpop.eup %3649  ;;  %3434 = vmatprep.subr.mxu0 %v174_v55 }
 0x2cb   :  { %v483_v50 = vsel %vm267_vm2, %v3650_v49, 0.0 }
 0x2cc   :  { %484 = vadd.xlane.f32.xlu1 %v483_v50 }
 0x2ce   :  { %v3652_v51 = vpop.eup %3651 }
 0x2cf   :  { %3431 = vmatprep.mubr.msk.f32.mxu0 %vm267_vm2, %v3652_v51  ;;  %v480_v52 = vsel %vm267_vm2, %v3652_v51, 0.0 }
 0x2d0   :  { %481 = vadd.xlane.f32.xlu0 %v480_v52  ;;  %3432 = vmatmul.mubr.msk.f32.vlgmr.msra.gmra.mxu0 %vm267_vm2, %v3650_v49 }
 0x2d1   :  { %3435 = vmatpush3.msra.mxu0 %v174_v55 }
 0x2d2   :  { %3439 = vmatprep.subr.mxu0 %v173_v56 }
 0x2d4   :  { %281 = vadd.xlane.f32.xlu0 %v280_v53  ;;  %v175_v53 = vld [vmem:[%s4366_s4 + $0x10] sm:$0xff] }
 0x2d8   :  { %284 = vadd.xlane.f32.xlu0 %v283_v54 }
 0x2dd   :  { %745 = vrot.lane.b32.xlu1 %v3919_v8, %s3802_s24 }
 0x2e1   :  { %739 = vrot.lane.b32.xlu1 %v3921_v10, %s3803_s0 }
 0x2e5   :  { %741 = vrot.lane.b32.xlu1 %v3919_v8, %s3803_s0 }
 0x2e9   :  { %1026 = vrot.lane.b32.xlu1 %v3921_v10, %s3804_s25 }
 0x2ed   :  { %1024 = vrot.lane.b32.xlu1 %v3919_v8, %s3805_s26 }
 0x2ee   :  { %743 = vrot.lane.b32.xlu0 %v3921_v10, %s3802_s24 }
 0x2f2   :  { %1028 = vrot.lane.b32.xlu0 %v3919_v8, %s3804_s25 }
 0x2f6   :  { %1022 = vrot.lane.b32.xlu0 %v3921_v10, %s3805_s26 }
 0x355   :  { %v485_v59 = vpop.xlane.xlu1 %484 }
 0x359   :  { %v482_v57 = vpop.xlane.xlu0 %481  ;;  %v746_v0 = vpop.permute.xlu1 %745 }
 0x35a   :  { %3653 = vrcp.f32 %v482_v57 }
 0x35b   :  { %3655 = vrcp.f32 %v485_v59 }
 0x35d   :  { %v282_v58 = vpop.xlane.xlu0 %281  ;;  %v740_v14 = vpop.permute.xlu1 %739 }
 0x35e   :  { %3657 = vrcp.f32 %v282_v58 }
 0x361   :  { %v285_v60 = vpop.xlane.xlu0 %284  ;;  %v742_v17 = vpop.permute.xlu1 %741 }
 0x362   :  { %3659 = vrcp.f32 %v285_v60 }
 0x365   :  { %v744_v12 = vpop.permute.xlu0 %743  ;;  %v1027_v21 = vpop.permute.xlu1 %1026 }
 0x367   :  { %v3654_v1 = vpop.eup %3653 }
 0x368   :  { %v3656_v4 = vpop.eup %3655 }
 0x369   :  { %v1029_v16 = vpop.permute.xlu0 %1028  ;;  %v1025_v22 = vpop.permute.xlu1 %1024 }
 0x36b   :  { %v3658_v7 = vpop.eup %3657 }
 0x36d   :  { %v1023_v19 = vpop.permute.xlu0 %1022 }
 0x36f   :  { %v3660_v13 = vpop.eup %3659 }
 0x386   :  { %v3419_v61 = vpop.f32.mrf.mxu0 }
 0x387   :  { %v376_v15 = vmul.f32 %v3660_v13, %v3419_v61 }
 0x388   :  { %v364_v62 = vpop.f32.mrf.mxu0 }
 0x389   :  { %v374_v11 = vmul.f32 %v3658_v7, %v364_v62 }
 0x390   :  { %v3433_v63 = vpop.f32.mrf.mxu0 }
 0x391   :  { %v576_v9 = vmul.f32 %v3656_v4, %v3433_v63 }
 0x392   :  { %v564_v3 = vpop.f32.mrf.mxu0 }
 0x393   :  { %v574_v6 = vmul.f32 %v3654_v1, %v564_v3 }
 0x395   :  { %3436 = vmatprep.mubr.msk.f32.mxu0 %vm183_vm1, %v574_v6 }
 0x396   :  { %3437 = vmatmul.mubr.msk.f32.vlgmr.msra.gmra.mxu0 %vm183_vm1, %v576_v9 }
 0x397   :  { %3440 = vmatpush3.msra.mxu0 %v173_v56  ;;  %3441 = vmatprep.mubr.msk.f32.mxu0 %vm183_vm1, %v374_v11 }
 0x398   :  { %3444 = vmatprep.subr.msk.mxu0 %vm183_vm1, %v746_v0 }
 0x39a   :  { %3442 = vmatmul.mubr.msk.f32.vlgmr.msra.gmra.mxu0 %vm183_vm1, %v376_v15 }
 0x39b   :  { %3445 = vmatpush3.xpose.msk.msra.mxu0 %vm183_vm1, %v746_v0  ;;  %3448 = vmatprep.mubr.msk.f32.mxu0 %vm183_vm1, %v740_v14 }
 0x39c   :  { %3446 = vmatprep.subr.msk.mxu0 %vm183_vm1, %v744_v12 }
 0x39f   :  { %3447 = vmatpush3.xpose.msk.msra.mxu0 %vm183_vm1, %v744_v12  ;;  %v176_v12 = vld [vmem:[%s4366_s4 + $0x18] sm:$0xff] }
 0x3a0   :  { %3463 = vmatprep.subr.msk.mxu0 %vm183_vm1, %v1029_v16 }
 0x3a2   :  { %3449 = vmatmul.mubr.msk.f32.vlgmr.msra.gmra.mxu0 %vm183_vm1, %v742_v17 }
 0x3a3   :  { %3464 = vmatpush3.xpose.msk.msra.mxu0 %vm183_vm1, %v1029_v16  ;;  %3467 = vmatprep.mubr.msk.f32.mxu0 %vm183_vm1, %v1023_v19 }
 0x3a4   :  { %3465 = vmatprep.subr.msk.mxu0 %vm183_vm1, %v1027_v21 }
 0x3a7   :  { %3466 = vmatpush3.xpose.msk.msra.mxu0 %vm183_vm1, %v1027_v21 }
 0x3aa   :  { %3468 = vmatmul.mubr.msk.f32.vlgmr.msra.gmra.mxu0 %vm183_vm1, %v1025_v22 }
 0x456   :  { %v3438_v23 = vpop.f32.mrf.mxu0 }
 0x458   :  { %v649_v24 = vpop.f32.mrf.mxu0 }
 0x45a   :  { %v3443_v25 = vpop.f32.mrf.mxu0 }
 0x45b   :  { %v4015_v26 = vadd.f32 %v3443_v25, %v3438_v23 }
 0x45c   :  { %v730_v27 = vpop.f32.mrf.mxu0 }
 0x45d   :  { %v4017_v28 = vadd.f32 %v730_v27, %v649_v24 }
 0x462   :  { %v3450_v29 = vpop.f32.mrf.mxu0 }
 0x463   :  { %v827_v30 = vadd.f32 %v3450_v29, %v3951_v18 }
 0x464   :  { %v821_v31 = vpop.f32.mrf.mxu0 }
 0x465   :  { %v822_v32 = vadd.f32 %v821_v31, %v3953_v20  ;;  %v833_v33 = vsel %vm267_vm2, %v827_v30, -inf }
 0x466   :  { %834 = vmax.xlane.f32.xlu1 %v833_v33 }
 0x467   :  { %v830_v34 = vsel %vm267_vm2, %v822_v32, -inf }
 0x468   :  { %831 = vmax.xlane.f32.xlu0 %v830_v34 }
 0x46a   :  { %v3469_v35 = vpop.f32.mrf.mxu0 }
 0x46b   :  { %v1110_v36 = vadd.f32 %v3469_v35, %v3951_v18 }
 0x46c   :  { %v1104_v37 = vpop.f32.mrf.mxu0 }
 0x46d   :  { %v1105_v38 = vadd.f32 %v1104_v37, %v3953_v20  ;;  %v1116_v39 = vsel %vm267_vm2, %v1110_v36, -inf }
 0x46f   :  { %v1113_v40 = vsel %vm267_vm2, %v1105_v38, -inf }
 0x477   :  { %848 = vrot.lane.b32.xlu1 %v3921_v10, %s3806_s30 }
 0x47e   :  { %850 = vrot.lane.b32.xlu0 %v3919_v8, %s3806_s30 }
 0x49d   :  { %1117 = vmax.xlane.f32.xlu0 %v1116_v39 }
 0x4a1   :  { %1114 = vmax.xlane.f32.xlu0 %v1113_v40 }
 0x4ef   :  { %v835_v41 = vpop.xlane.xlu1 %834 }
 0x4f0   :  { %v837_v42 = vsub.f32 %v827_v30, %v835_v41  ;;  %v3178_v30 = vld [vmem:[%s4367_s5] ss:$0 sm:$0xff] }
 0x4f1   :  { %v832_v43 = vpop.xlane.xlu0 %831 }
 0x4f2   :  { %v840_v44 = vmul.f32 1.442695, %v837_v42  ;;  %v836_v45 = vsub.f32 %v822_v32, %v832_v43 }
 0x4f3   :  { %v849_v48 = vpop.permute.xlu1 %848 }
 0x4f4   :  { %3661 = vpow2.f32 %v840_v44  ;;  %v838_v46 = vmul.f32 1.442695, %v836_v45 }
 0x4f5   :  { %v851_v47 = vpop.permute.xlu0 %850 }
 0x4f6   :  { %3663 = vpow2.f32 %v838_v46  ;;  %3451 = vmatprep.subr.mxu1 %v851_v47 }
 0x4f7   :  { %3452 = vmatpush3.msra.mxu1 %v851_v47  ;;  %v1363_v47 = vld [vmem:[%s4370_s8 + $0x10] sm:$0xff] }
 0x4f8   :  { %3453 = vmatprep.subr.mxu1 %v849_v48 }
 0x4f9   :  { %3454 = vmatpush3.msra.mxu1 %v849_v48  ;;  %v1362_v48 = vld [vmem:[%s4370_s8 + $0x8] sm:$0xff] }
 0x4fa   :  { %3458 = vmatprep.subr.mxu1 %v175_v53 }
 0x501   :  { %v3662_v49 = vpop.eup %3661 }
 0x502   :  { %v845_v50 = vsel %vm267_vm2, %v3662_v49, 0.0 }
 0x503   :  { %v3664_v51 = vpop.eup %3663  ;;  %846 = vadd.xlane.f32.xlu1 %v845_v50  ;;  %v1462_v50 = vld [vmem:[%s4372_s10 + $0x38] sm:$0xff] }
 0x504   :  { %3455 = vmatprep.mubr.msk.f32.mxu1 %vm267_vm2, %v3664_v51  ;;  %v842_v52 = vsel %vm267_vm2, %v3664_v51, 0.0  ;;  %v1461_v51 = vld [vmem:[%s4372_s10 + $0x30] sm:$0xff] }
 0x505   :  { %843 = vadd.xlane.f32.xlu0 %v842_v52  ;;  %3456 = vmatmul.mubr.msk.f32.vlgmr.msra.gmra.mxu1 %vm267_vm2, %v3662_v49  ;;  %v1361_v49 = vld [vmem:[%s4370_s8] sm:$0xff]  ;;  %v1460_v52 = vld [vmem:[%s4372_s10 + $0x28] sm:$0xff] }
 0x506   :  { %3459 = vmatpush3.msra.mxu1 %v175_v53  ;;  %v1459_v53 = vld [vmem:[%s4372_s10 + $0x20] sm:$0xff] }
 0x514   :  { %1133 = vrot.lane.b32.xlu1 %v3919_v8, %s4379_s27 }
 0x51b   :  { %1131 = vrot.lane.b32.xlu0 %v3921_v10, %s4379_s27 }
 0x526   :  { %v1118_v54 = vpop.xlane.xlu0 %1117 }
 0x527   :  { %v1120_v55 = vsub.f32 %v1110_v36, %v1118_v54 }
 0x529   :  { %v1123_v56 = vmul.f32 1.442695, %v1120_v55 }
 0x52a   :  { %v1115_v57 = vpop.xlane.xlu0 %1114 }
 0x52b   :  { %3665 = vpow2.f32 %v1123_v56  ;;  %v1119_v58 = vsub.f32 %v1105_v38, %v1115_v57 }
 0x52d   :  { %v1121_v59 = vmul.f32 1.442695, %v1119_v58 }
 0x52f   :  { %3667 = vpow2.f32 %v1121_v59 }
 0x538   :  { %v3666_v60 = vpop.eup %3665 }
 0x539   :  { %v1128_v61 = vsel %vm267_vm2, %v3666_v60, 0.0 }
 0x53a   :  { %1129 = vadd.xlane.f32.xlu0 %v1128_v61  ;;  %v3179_v61 = vld [vmem:[%s4368_s6] ss:$0 sm:$0xff] }
 0x53c   :  { %v3668_v62 = vpop.eup %3667 }
 0x53d   :  { %v1125_v63 = vsel %vm267_vm2, %v3668_v62, 0.0 }
 0x53e   :  { %1126 = vadd.xlane.f32.xlu1 %v1125_v63 }
 0x58c   :  { %v847_v8 = vpop.xlane.xlu1 %846 }
 0x58e   :  { %v844_v10 = vpop.xlane.xlu0 %843 }
 0x58f   :  { %3669 = vrcp.f32 %v844_v10  ;;  %v3180_v10 = vld [vmem:[%s4369_s7] ss:$0 sm:$0xff] }
 0x590   :  { %v1134_v0 = vpop.permute.xlu1 %1133  ;;  %3671 = vrcp.f32 %v847_v8 }
 0x591   :  { %3470 = vmatprep.subr.mxu1 %v1134_v0 }
 0x592   :  { %v1132_v11 = vpop.permute.xlu0 %1131 }
 0x59c   :  { %v3670_v3 = vpop.eup %3669 }
 0x59d   :  { %v3672_v6 = vpop.eup %3671 }
 0x5c3   :  { %v1130_v14 = vpop.xlane.xlu0 %1129 }
 0x5c5   :  { %v3457_v1 = vpop.f32.mrf.mxu1 }
 0x5c6   :  { %v938_v9 = vmul.f32 %v3672_v6, %v3457_v1  ;;  %v1458_v6 = vld [vmem:[%s4372_s10 + $0x18] sm:$0xff] }
 0x5c7   :  { %v926_v4 = vpop.f32.mrf.mxu1  ;;  %v1127_v13 = vpop.xlane.xlu1 %1126 }
 0x5c8   :  { %v936_v7 = vmul.f32 %v3670_v3, %v926_v4  ;;  %3673 = vrcp.f32 %v1127_v13 }
 0x5c9   :  { %3675 = vrcp.f32 %v1130_v14 }
 0x5ca   :  { %3460 = vmatprep.mubr.msk.f32.mxu1 %vm183_vm1, %v936_v7  ;;  %v1457_v7 = vld [vmem:[%s4372_s10 + $0x10] sm:$0xff] }
 0x5cb   :  { %3461 = vmatmul.mubr.msk.f32.vlgmr.msra.gmra.mxu1 %vm183_vm1, %v938_v9  ;;  %v1456_v9 = vld [vmem:[%s4372_s10 + $0x8] sm:$0xff] }
 0x5cc   :  { %3471 = vmatpush3.msra.mxu1 %v1134_v0  ;;  %3474 = vmatprep.mubr.msk.f32.mxu1 %vm267_vm2, %v3668_v62 }
 0x5cd   :  { %3472 = vmatprep.subr.mxu1 %v1132_v11 }
 0x5ce   :  { %3473 = vmatpush3.msra.mxu1 %v1132_v11  ;;  %v1455_v11 = vld [vmem:[%s4372_s10] sm:$0xff] }
 0x5cf   :  { %3475 = vmatmul.mubr.msk.f32.vlgmr.msra.gmra.mxu1 %vm267_vm2, %v3666_v60  ;;  %3477 = vmatprep.subr.mxu1 %v176_v12 }
 0x5d0   :  { %3478 = vmatpush3.msra.mxu1 %v176_v12  ;;  %v3181_v12 = vld [vmem:[%s4371_s9] ss:$0 sm:$0xff] }
 0x5d1   :  { %3493 = vmatprep.subr.mxu1 %v1462_v50 }
 0x5d5   :  { %v3674_v22 = vpop.eup %3673 }
 0x5d6   :  { %v3676_v24 = vpop.eup %3675 }
 0x68b   :  { %v3462_v15 = vpop.f32.mrf.mxu1 }
 0x68c   :  { %v1021_v16 = vadd.f32 %v3462_v15, %v4015_v26 }
 0x68d   :  { %v1011_v17 = vpop.f32.mrf.mxu1 }
 0x68e   :  { %v1020_v19 = vadd.f32 %v1011_v17, %v4017_v28 }
 0x68f   :  { %v3476_v21 = vpop.f32.mrf.mxu1 }
 0x690   :  { %v1221_v27 = vmul.f32 %v3676_v24, %v3476_v21  ;;  %v3184_v21 = vld [vmem:[%s4373_s11] ss:$0 sm:$0xff] }
 0x691   :  { %v1209_v23 = vpop.f32.mrf.mxu1 }
 0x692   :  { %v1219_v25 = vmul.f32 %v3674_v22, %v1209_v23 }
 0x694   :  { %3479 = vmatprep.mubr.msk.f32.mxu1 %vm183_vm1, %v1219_v25 }
 0x695   :  { %3480 = vmatmul.mubr.msk.f32.vlgmr.msra.gmra.mxu1 %vm183_vm1, %v1221_v27 }
 0x696   :  { %3494 = vmatpush3.msra.mxu1 %v1462_v50 }
 0x697   :  { %3495 = vmatprep.subr.mxu1 %v1461_v51 }
 0x698   :  { %3496 = vmatpush3.msra.mxu1 %v1461_v51 }
 0x699   :  { %3497 = vmatprep.subr.mxu1 %v1460_v52 }
 0x69a   :  { %3498 = vmatpush3.msra.mxu1 %v1460_v52 }
 0x69b   :  { %3499 = vmatprep.subr.mxu1 %v1459_v53 }
 0x69c   :  { %3500 = vmatpush3.msra.mxu1 %v1459_v53 }
 0x69d   :  { %3501 = vmatprep.subr.mxu1 %v1458_v6 }
 0x69e   :  { %3502 = vmatpush3.msra.mxu1 %v1458_v6 }
 0x69f   :  { %3503 = vmatprep.subr.mxu1 %v1457_v7 }
 0x6a0   :  { %3504 = vmatpush3.msra.mxu1 %v1457_v7 }
 0x6a1   :  { %3505 = vmatprep.subr.mxu1 %v1456_v9 }
 0x6a2   :  { %3506 = vmatpush3.msra.mxu1 %v1456_v9 }
 0x6a3   :  { %3507 = vmatprep.subr.mxu1 %v1455_v11 }
 0x6a4   :  { %3508 = vmatpush3.msra.mxu1 %v1455_v11 }
 0x755   :  { %v3481_v29 = vpop.f32.mrf.mxu1 }
 0x756   :  { %v1304_v31 = vadd.f32 %v3481_v29, %v1021_v16 }
 0x757   :  { %v1294_v26 = vpop.f32.mrf.mxu1 }
 0x758   :  { %v1313_v32 = vadd.f32 %v3178_v30, %v1304_v31  ;;  %v1303_v33 = vadd.f32 %v1294_v26, %v1020_v19 }
 0x75a   :  { %v1312_v28 = vadd.f32 %v3178_v30, %v1303_v33  ;;  %v1315_v34 = vadd.f32 %v1313_v32, %v3912_v5 }
 0x75c   :  { %v1321_v35 = vsel %vm91_vm0, %v1315_v34, 0.0  ;;  %v1314_v36 = vadd.f32 %v1312_v28, %v3902_v2  ;;  %v1364_v2 = vld [vmem:[%s4370_s8 + $0x18] sm:$0xff] }
 0x75d   :  { %1322 = vadd.xlane.f32.xlu0 %v1321_v35  ;;  %3482 = vmatprep.subr.mxu0 %v1364_v2 }
 0x75e   :  { %v1318_v37 = vsel %vm91_vm0, %v1314_v36, 0.0  ;;  %3483 = vmatpush3.msra.mxu0 %v1364_v2 }
 0x75f   :  { %1319 = vadd.xlane.f32.xlu1 %v1318_v37  ;;  %3484 = vmatprep.subr.mxu0 %v1363_v47 }
 0x760   :  { %3485 = vmatpush3.msra.mxu0 %v1363_v47 }
 0x761   :  { %3486 = vmatprep.subr.mxu0 %v1362_v48 }
 0x762   :  { %3487 = vmatpush3.msra.mxu0 %v1362_v48 }
 0x763   :  { %3488 = vmatprep.subr.mxu0 %v1361_v49 }
 0x764   :  { %3489 = vmatpush3.msra.mxu0 %v1361_v49  ;;  %v3187_v49 = vld [vmem:[%s4374_s12] ss:$0 sm:$0xff] }
 0x7e6   :  { %v1323_v38 = vpop.xlane.xlu0 %1322 }
 0x7e7   :  { %v1326_v39 = vmul.f32 0.03125, %v1323_v38 }
 0x7e8   :  { %v1320_v40 = vpop.xlane.xlu1 %1319 }
 0x7e9   :  { %v1328_v41 = vsub.f32 %v1315_v34, %v1326_v39  ;;  %v1325_v42 = vmul.f32 0.03125, %v1320_v40  ;;  %v3192_v40 = vld [vmem:[%s4364_s2 + $0x38] sm:$0xff] }
 0x7ea   :  { %3512 = vmatprep.subr.mxu0 %v3192_v40 }
 0x7eb   :  { %v1327_v43 = vsub.f32 %v1314_v36, %v1325_v42  ;;  %v1330_v44 = vmul.f32 %v1328_v41, %v1328_v41  ;;  %v3190_v42 = vld [vmem:[%s4364_s2 + $0x28] sm:$0xff] }
 0x7ed   :  { %v1334_v45 = vsel %vm91_vm0, %v1330_v44, 0.0  ;;  %v1329_v46 = vmul.f32 %v1327_v43, %v1327_v43 }
 0x7ee   :  { %1335 = vadd.xlane.f32.xlu0 %v1334_v45 }
 0x7ef   :  { %v1331_v5 = vsel %vm91_vm0, %v1329_v46, 0.0 }
 0x7f0   :  { %1332 = vadd.xlane.f32.xlu1 %v1331_v5 }
 0x877   :  { %v1336_v54 = vpop.xlane.xlu0 %1335 }
 0x878   :  { %v1338_v55 = vmul.f32 0.03125, %v1336_v54  ;;  %v3188_v54 = vld [vmem:[%s4375_s13] ss:$0 sm:$0xff] }
 0x879   :  { %v1333_v56 = vpop.xlane.xlu1 %1332 }
 0x87a   :  { %v1340_v57 = vadd.f32 1e-05, %v1338_v55  ;;  %v1337_v58 = vmul.f32 0.03125, %v1333_v56 }
 0x87c   :  { %3677 = vrsqrt.f32 %v1340_v57  ;;  %v1339_v59 = vadd.f32 1e-05, %v1337_v58  ;;  %v3194_v58 = vld [vmem:[%s4365_s3 + $0x1] ss:$0 sm:$0xff] }
 0x87e   :  { %3679 = vrsqrt.f32 %v1339_v59 }
 0x889   :  { %v3678_v60 = vpop.eup %3677 }
 0x88a   :  { %v1344_v62 = vmul.f32 %v3678_v60, %v1328_v41  ;;  %v3191_v41 = vld [vmem:[%s4364_s2 + $0x30] sm:$0xff] }
 0x88b   :  { %v3680_v63 = vpop.eup %3679 }
 0x88c   :  { %v1343_v8 = vmul.f32 %v3680_v63, %v1327_v43  ;;  %v1352_v0 = vmul.f32 %v3179_v61, %v1344_v62  ;;  %v3189_v43 = vld [vmem:[%s4364_s2 + $0x20] sm:$0xff] }
 0x88e   :  { %v1351_v1 = vmul.f32 %v3179_v61, %v1343_v8  ;;  %v1360_v4 = vadd.f32 %v3180_v10, %v1352_v0 }
 0x890   :  { %v1359_v3 = vadd.f32 %v3180_v10, %v1351_v1 }
 0x892   :  { %3490 = vmatprep.mubr.msk.f32.mxu0 %vm91_vm0, %v1359_v3 }
 0x893   :  { %3491 = vmatmul.mubr.msk.f32.vlgmr.msra.gmra.mxu0 %vm91_vm0, %v1360_v4 }
 0x894   :  { %3513 = vmatpush3.msra.mxu0 %v3192_v40 }
 0x895   :  { %3514 = vmatprep.subr.mxu0 %v3191_v41 }
 0x896   :  { %3515 = vmatpush3.msra.mxu0 %v3191_v41 }
 0x897   :  { %3516 = vmatprep.subr.mxu0 %v3190_v42 }
 0x898   :  { %3517 = vmatpush3.msra.mxu0 %v3190_v42 }
 0x899   :  { %3518 = vmatprep.subr.mxu0 %v3189_v43 }
 0x89a   :  { %3519 = vmatpush3.msra.mxu0 %v3189_v43  ;;  %v3198_v43 = vld [vmem:[%s4366_s4 + $0x28] sm:$0xff] }
 0x953   :  { %v3492_v13 = vpop.f32.mrf.mxu0 }
 0x954   :  { %v1450_v14 = vadd.f32 %v3492_v13, %v3181_v12 }
 0x955   :  { %v1444_v15 = vpop.f32.mrf.mxu0 }
 0x956   :  { %v1445_v16 = vadd.f32 %v3181_v12, %v1444_v15  ;;  %v1454_v19 = vmax.f32 %v1450_v14, 0.0 }
 0x958   :  { %v1453_v17 = vmax.f32 %v1445_v16, 0.0 }
 0x95a   :  { %3509 = vmatprep.mubr.msk.f32.mxu1 %vm1470_vm3, %v1453_v17 }
 0x95b   :  { %3510 = vmatmul.mubr.msk.f32.vlgmr.msra.gmra.mxu1 %vm1470_vm3, %v1454_v19 }
 0xa1b   :  { %v3511_v22 = vpop.f32.mrf.mxu1 }
 0xa1c   :  { %v1549_v23 = vadd.f32 %v3511_v22, %v3184_v21 }
 0xa1d   :  { %v1543_v24 = vpop.f32.mrf.mxu1 }
 0xa1e   :  { %v1544_v25 = vadd.f32 %v3184_v21, %v1543_v24  ;;  %v1553_v27 = vadd.f32 %v1549_v23, %v1360_v4 }
 0xa20   :  { %v1559_v29 = vsel %vm91_vm0, %v1553_v27, 0.0  ;;  %v1552_v30 = vadd.f32 %v1544_v25, %v1359_v3 }
 0xa21   :  { %1560 = vadd.xlane.f32.xlu0 %v1559_v29 }
 0xa22   :  { %v1556_v31 = vsel %vm91_vm0, %v1552_v30, 0.0 }
 0xa23   :  { %1557 = vadd.xlane.f32.xlu1 %v1556_v31 }
 0xaaa   :  { %v1561_v26 = vpop.xlane.xlu0 %1560 }
 0xaab   :  { %v1563_v32 = vmul.f32 0.03125, %v1561_v26 }
 0xaac   :  { %v1558_v33 = vpop.xlane.xlu1 %1557 }
 0xaad   :  { %v1565_v28 = vsub.f32 %v1553_v27, %v1563_v32  ;;  %v1562_v34 = vmul.f32 0.03125, %v1558_v33 }
 0xaaf   :  { %v1564_v35 = vsub.f32 %v1552_v30, %v1562_v34  ;;  %v1567_v36 = vmul.f32 %v1565_v28, %v1565_v28 }
 0xab1   :  { %v1571_v37 = vsel %vm91_vm0, %v1567_v36, 0.0  ;;  %v1566_v38 = vmul.f32 %v1564_v35, %v1564_v35 }
 0xab2   :  { %1572 = vadd.xlane.f32.xlu0 %v1571_v37 }
 0xab3   :  { %v1568_v39 = vsel %vm91_vm0, %v1566_v38, 0.0 }
 0xab4   :  { %1569 = vadd.xlane.f32.xlu1 %v1568_v39 }
 0xb3b   :  { %v1573_v44 = vpop.xlane.xlu0 %1572 }
 0xb3c   :  { %v1575_v45 = vmul.f32 0.03125, %v1573_v44 }
 0xb3d   :  { %v1570_v46 = vpop.xlane.xlu1 %1569 }
 0xb3e   :  { %v1577_v5 = vadd.f32 1e-05, %v1575_v45  ;;  %v1574_v2 = vmul.f32 0.03125, %v1570_v46  ;;  %v3197_v46 = vld [vmem:[%s4366_s4 + $0x20] sm:$0xff] }
 0xb40   :  { %3681 = vrsqrt.f32 %v1577_v5  ;;  %v1576_v47 = vadd.f32 1e-05, %v1574_v2 }
 0xb42   :  { %3683 = vrsqrt.f32 %v1576_v47 }
 0xb4d   :  { %v3682_v48 = vpop.eup %3681 }
 0xb4e   :  { %v1581_v50 = vmul.f32 %v3682_v48, %v1565_v28 }
 0xb4f   :  { %v3684_v51 = vpop.eup %3683 }
 0xb50   :  { %v1580_v52 = vmul.f32 %v3684_v51, %v1564_v35  ;;  %v1589_v53 = vmul.f32 %v3187_v49, %v1581_v50 }
 0xb52   :  { %v1588_v55 = vmul.f32 %v3187_v49, %v1580_v52  ;;  %v4140_v57 = vadd.f32 %v3188_v54, %v1589_v53 }
 0xb54   :  { %v4138_v56 = vadd.f32 %v3188_v54, %v1588_v55 }
 0xb56   :  { %3520 = vmatprep.mubr.msk.f32.mxu0 %vm91_vm0, %v4138_v56 }
 0xb57   :  { %3521 = vmatmul.mubr.msk.f32.vlgmr.msra.gmra.mxu0 %vm91_vm0, %v4140_v57 }
 0xc17   :  { %v3522_v59 = vpop.f32.mrf.mxu0 }
 0xc18   :  { %v4149_v60 = vadd.f32 %v3522_v59, %v3194_v58 }
 0xc19   :  { %v1683_v61 = vpop.f32.mrf.mxu0 }
 0xc1a   :  { %v4151_v62 = vadd.f32 %v3194_v58, %v1683_v61  ;;  %1701 = vrot.lane.b32.xlu1 %v4149_v60, %s3798_s20 }
 0xc1c   :  { %1699 = vrot.lane.b32.xlu0 %v4151_v62, %s3798_s20  ;;  %3527 = vmatprep.mubr.msk.f32.mxu0 %vm183_vm1, %v4151_v62 }
 0xc1e   :  { %1806 = vrot.lane.b32.xlu1 %v4149_v60, %s3800_s22 }
 0xc22   :  { %1901 = vrot.lane.b32.xlu1 %v4149_v60, %s3797_s19 }
 0xc8c   :  { %v1702_v63 = vpop.permute.xlu1 %1701 }
 0xc8d   :  { %3523 = vmatprep.subr.msk.mxu0 %vm183_vm1, %v1702_v63 }
 0xc8e   :  { %3524 = vmatpush3.xpose.msk.msra.mxu0 %vm183_vm1, %v1702_v63  ;;  %v1700_v8 = vpop.permute.xlu0 %1699 }
 0xc8f   :  { %3525 = vmatprep.subr.msk.mxu0 %vm183_vm1, %v1700_v8 }
 0xc90   :  { %v1807_v0 = vpop.permute.xlu1 %1806 }
 0xc91   :  { %3530 = vmatprep.subr.mxu1 %v1807_v0 }
 0xc92   :  { %3526 = vmatpush3.xpose.msk.msra.mxu0 %vm183_vm1, %v1700_v8  ;;  %3531 = vmatpush3.msra.mxu1 %v1807_v0 }
 0xc94   :  { %v1902_v9 = vpop.permute.xlu1 %1901 }
 0xc95   :  { %3528 = vmatmul.mubr.msk.f32.vlgmr.msra.gmra.mxu0 %vm183_vm1, %v4149_v60 }
 0xd55   :  { %v3529_v10 = vpop.f32.mrf.mxu0 }
 0xd56   :  { %v1783_v1 = vadd.f32 %v3529_v10, %v3951_v18 }
 0xd57   :  { %v1777_v3 = vpop.f32.mrf.mxu0 }
 0xd58   :  { %v1778_v4 = vadd.f32 %v1777_v3, %v3953_v20  ;;  %v1789_v6 = vsel %vm267_vm2, %v1783_v1, -inf }
 0xd59   :  { %1790 = vmax.xlane.f32.xlu0 %v1789_v6 }
 0xd5a   :  { %v1786_v7 = vsel %vm267_vm2, %v1778_v4, -inf }
 0xd5b   :  { %1787 = vmax.xlane.f32.xlu1 %v1786_v7 }
 0xd6c   :  { %1899 = vrot.lane.b32.xlu1 %v4151_v62, %s3797_s19 }
 0xd6f   :  { %1804 = vrot.lane.b32.xlu0 %v4151_v62, %s3800_s22 }
 0xd70   :  { %1897 = vrot.lane.b32.xlu1 %v4149_v60, %s3799_s21 }
 0xd73   :  { %1895 = vrot.lane.b32.xlu0 %v4151_v62, %s3799_s21 }
 0xde2   :  { %v1791_v11 = vpop.xlane.xlu0 %1790 }
 0xde3   :  { %v1793_v12 = vsub.f32 %v1783_v1, %v1791_v11 }
 0xde4   :  { %v1788_v13 = vpop.xlane.xlu1 %1787 }
 0xde5   :  { %v1792_v14 = vsub.f32 %v1778_v4, %v1788_v13  ;;  %v1796_v15 = vmul.f32 1.442695, %v1793_v12  ;;  %v3725_v13 = vld [vmem:[#allocation5 + $0x8] sm:$0xff] }
 0xde6   :  { %v1805_v16 = vpop.permute.xlu0 %1804 }
 0xde7   :  { %v1794_v17 = vmul.f32 1.442695, %v1792_v14  ;;  %3532 = vmatprep.subr.mxu1 %v1805_v16 }
 0xde8   :  { %3533 = vmatpush3.msra.mxu1 %v1805_v16  ;;  %v1900_v23 = vpop.permute.xlu1 %1899  ;;  %v3726_v16 = vld [vmem:[#allocation5] sm:$0xff] }
 0xde9   :  { %3685 = vpow2.f32 %v1794_v17  ;;  %3537 = vmatprep.subr.msk.mxu1 %vm183_vm1, %v1902_v9 }
 0xdea   :  { %3687 = vpow2.f32 %v1796_v15  ;;  %v1896_v22 = vpop.permute.xlu0 %1895 }
 0xdec   :  { %v1898_v24 = vpop.permute.xlu1 %1897 }
 0xdf6   :  { %v3686_v19 = vpop.eup %3685 }
 0xdf7   :  { %v3688_v21 = vpop.eup %3687  ;;  %3534 = vmatprep.mubr.msk.f32.mxu1 %vm267_vm2, %v3686_v19  ;;  %v1798_v45 = vsel %vm267_vm2, %v3686_v19, 0.0 }
 0xdf8   :  { %3535 = vmatmul.mubr.msk.f32.vlgmr.msra.gmra.mxu1 %vm267_vm2, %v3688_v21  ;;  %v1801_v44 = vsel %vm267_vm2, %v3688_v21, 0.0 }
 0xdf9   :  { %3538 = vmatpush3.xpose.msk.msra.mxu1 %vm183_vm1, %v1902_v9  ;;  %3541 = vmatprep.mubr.msk.f32.mxu1 %vm183_vm1, %v1896_v22 }
 0xdfa   :  { %3539 = vmatprep.subr.msk.mxu1 %vm183_vm1, %v1900_v23 }
 0xdfd   :  { %3540 = vmatpush3.xpose.msk.msra.mxu1 %vm183_vm1, %v1900_v23 }
 0xdfe   :  { %3556 = vmatprep.subr.mxu1 %v3197_v46 }
 0xe00   :  { %3542 = vmatmul.mubr.msk.f32.vlgmr.msra.gmra.mxu1 %vm183_vm1, %v1898_v24 }
 0xe01   :  { %3557 = vmatpush3.msra.mxu1 %v3197_v46 }
 0xeb8   :  { %v4189_v25 = vpop.f32.mrf.mxu1 }
 0xeba   :  { %v4191_v27 = vpop.f32.mrf.mxu1 }
 0xec0   :  { %v3543_v29 = vpop.f32.mrf.mxu1 }
 0xec1   :  { %v1983_v30 = vadd.f32 %v3543_v29, %v3951_v18 }
 0xec2   :  { %v1977_v31 = vpop.f32.mrf.mxu1 }
 0xec3   :  { %v1978_v26 = vadd.f32 %v1977_v31, %v3953_v20  ;;  %v1989_v32 = vsel %vm267_vm2, %v1983_v30, -inf }
 0xec4   :  { %1990 = vmax.xlane.f32.xlu1 %v1989_v32 }
 0xec5   :  { %v1986_v33 = vsel %vm267_vm2, %v1978_v26, -inf }
 0xec6   :  { %1987 = vmax.xlane.f32.xlu0 %v1986_v33 }
 0xed5   :  { %2004 = vrot.lane.b32.xlu1 %v4151_v62, %s3801_s23 }
 0xedc   :  { %2006 = vrot.lane.b32.xlu0 %v4149_v60, %s3801_s23 }
 0xf4d   :  { %v1991_v28 = vpop.xlane.xlu1 %1990 }
 0xf4e   :  { %v1993_v34 = vsub.f32 %v1983_v30, %v1991_v28 }
 0xf4f   :  { %v1988_v35 = vpop.xlane.xlu0 %1987 }
 0xf50   :  { %v1996_v36 = vmul.f32 1.442695, %v1993_v34  ;;  %v1992_v18 = vsub.f32 %v1978_v26, %v1988_v35 }
 0xf51   :  { %v2005_v38 = vpop.permute.xlu1 %2004 }
 0xf52   :  { %3689 = vpow2.f32 %v1996_v36  ;;  %v1994_v37 = vmul.f32 1.442695, %v1992_v18 }
 0xf53   :  { %v2007_v20 = vpop.permute.xlu0 %2006 }
 0xf54   :  { %3691 = vpow2.f32 %v1994_v37  ;;  %3544 = vmatprep.subr.mxu0 %v2007_v20 }
 0xf55   :  { %3545 = vmatpush3.msra.mxu0 %v2007_v20 }
 0xf56   :  { %3546 = vmatprep.subr.mxu0 %v2005_v38 }
 0xf57   :  { %3547 = vmatpush3.msra.mxu0 %v2005_v38 }
 0xf58   :  { %3551 = vmatprep.subr.mxu0 %v3198_v43 }
 0xf5f   :  { %v3690_v39 = vpop.eup %3689 }
 0xf60   :  { %v2001_v40 = vsel %vm267_vm2, %v3690_v39, 0.0 }
 0xf61   :  { %v3692_v41 = vpop.eup %3691  ;;  %2002 = vadd.xlane.f32.xlu1 %v2001_v40 }
 0xf62   :  { %3548 = vmatprep.mubr.msk.f32.mxu0 %vm267_vm2, %v3692_v41  ;;  %v1998_v42 = vsel %vm267_vm2, %v3692_v41, 0.0 }
 0xf63   :  { %1999 = vadd.xlane.f32.xlu0 %v1998_v42  ;;  %3549 = vmatmul.mubr.msk.f32.vlgmr.msra.gmra.mxu0 %vm267_vm2, %v3690_v39  ;;  %v3199_v39 = vld [vmem:[%s4366_s4 + $0x30] sm:$0xff] }
 0xf64   :  { %3552 = vmatpush3.msra.mxu0 %v3198_v43 }
 0xf72   :  { %2261 = vrot.lane.b32.xlu1 %v4151_v62, %s3802_s24 }
 0xf76   :  { %2259 = vrot.lane.b32.xlu1 %v4149_v60, %s3803_s0 }
 0xf79   :  { %2263 = vrot.lane.b32.xlu0 %v4149_v60, %s3802_s24  ;;  %s4381_s24 = smov 40  }
 0xf7a   :  { %2544 = vrot.lane.b32.xlu1 %v4151_v62, %s3804_s25 }
 0xf7d   :  { %2257 = vrot.lane.b32.xlu0 %v4151_v62, %s3803_s0 }
 0xf7e   :  { %2542 = vrot.lane.b32.xlu1 %v4149_v60, %s3805_s26 }
 0xf81   :  { %2546 = vrot.lane.b32.xlu0 %v4149_v60, %s3804_s25 }
 0xf85   :  { %2540 = vrot.lane.b32.xlu0 %v4151_v62, %s3805_s26 }
 0xfa2   :  { %1802 = vadd.xlane.f32.xlu1 %v1801_v44 }
 0xfa4   :  { %1799 = vadd.xlane.f32.xlu0 %v1798_v45 }
 0xfb3   :  { %2368 = vrot.lane.b32.xlu1 %v4149_v60, %s3806_s30 }
 0xfea   :  { %v2003_v47 = vpop.xlane.xlu1 %2002 }
 0xfec   :  { %v2000_v5 = vpop.xlane.xlu0 %1999 }
 0xfed   :  { %3693 = vrcp.f32 %v2000_v5 }
 0xfee   :  { %v2262_v48 = vpop.permute.xlu1 %2261  ;;  %3695 = vrcp.f32 %v2003_v47 }
 0xff0   :  { %v2264_v2 = vpop.permute.xlu0 %2263 }
 0xff1   :  { %3561 = vmatprep.subr.msk.mxu0 %vm183_vm1, %v2264_v2 }
 0xff2   :  { %v2260_v49 = vpop.permute.xlu1 %2259 }
 0xff4   :  { %v2258_v50 = vpop.permute.xlu0 %2257 }
 0xff6   :  { %v2545_v51 = vpop.permute.xlu1 %2544 }
 0xff8   :  { %v2547_v52 = vpop.permute.xlu0 %2546 }
 0xffa   :  { %v3694_v54 = vpop.eup %3693  ;;  %v2543_v61 = vpop.permute.xlu1 %2542 }
 0xffb   :  { %v3696_v58 = vpop.eup %3695 }
 0xffc   :  { %v2541_v8 = vpop.permute.xlu0 %2540 }
0x1023   :  { %v3550_v53 = vpop.f32.mrf.mxu0 }
0x1024   :  { %v2094_v63 = vmul.f32 %v3696_v58, %v3550_v53 }
0x1025   :  { %v2082_v55 = vpop.f32.mrf.mxu0 }
0x1026   :  { %v2092_v59 = vmul.f32 %v3694_v54, %v2082_v55 }
0x1028   :  { %3553 = vmatprep.mubr.msk.f32.mxu0 %vm183_vm1, %v2092_v59  ;;  %v3200_v59 = vld [vmem:[%s4366_s4 + $0x38] sm:$0xff] }
0x1029   :  { %3554 = vmatmul.mubr.msk.f32.vlgmr.msra.gmra.mxu0 %vm183_vm1, %v2094_v63 }
0x102a   :  { %3562 = vmatpush3.xpose.msk.msra.mxu0 %vm183_vm1, %v2264_v2  ;;  %3565 = vmatprep.mubr.msk.f32.mxu0 %vm183_vm1, %v2258_v50 }
0x102b   :  { %3563 = vmatprep.subr.msk.mxu0 %vm183_vm1, %v2262_v48  ;;  %v1803_v0 = vpop.xlane.xlu1 %1802 }
0x102c   :  { %3697 = vrcp.f32 %v1803_v0 }
0x102d   :  { %v1800_v10 = vpop.xlane.xlu0 %1799 }
0x102e   :  { %3564 = vmatpush3.xpose.msk.msra.mxu0 %vm183_vm1, %v2262_v48  ;;  %3699 = vrcp.f32 %v1800_v10 }
0x102f   :  { %3580 = vmatprep.subr.msk.mxu0 %vm183_vm1, %v2547_v52  ;;  %v2369_v1 = vpop.permute.xlu1 %2368 }
0x1030   :  { %3568 = vmatprep.subr.mxu1 %v2369_v1 }
0x1031   :  { %3566 = vmatmul.mubr.msk.f32.vlgmr.msra.gmra.mxu0 %vm183_vm1, %v2260_v49 }
0x1032   :  { %3581 = vmatpush3.xpose.msk.msra.mxu0 %vm183_vm1, %v2547_v52  ;;  %3584 = vmatprep.mubr.msk.f32.mxu0 %vm183_vm1, %v2541_v8 }
0x1033   :  { %3582 = vmatprep.subr.msk.mxu0 %vm183_vm1, %v2545_v51 }
0x1036   :  { %3583 = vmatpush3.xpose.msk.msra.mxu0 %vm183_vm1, %v2545_v51 }
0x1039   :  { %3585 = vmatmul.mubr.msk.f32.vlgmr.msra.gmra.mxu0 %vm183_vm1, %v2543_v61  ;;  %v3698_v3 = vpop.eup %3697 }
0x103a   :  { %v1894_v7 = vmul.f32 %v3698_v3, %v4189_v25 }
0x103b   :  { %v3700_v4 = vpop.eup %3699 }
0x103c   :  { %v1892_v6 = vmul.f32 %v3700_v4, %v4191_v27 }
0x103e   :  { %3558 = vmatprep.mubr.msk.f32.mxu1 %vm183_vm1, %v1892_v6 }
0x103f   :  { %3559 = vmatmul.mubr.msk.f32.vlgmr.msra.gmra.mxu1 %vm183_vm1, %v1894_v7 }
0x1040   :  { %3569 = vmatpush3.msra.mxu1 %v2369_v1 }
0x10e9   :  { %v3555_v9 = vpop.f32.mrf.mxu0 }
0x10eb   :  { %v4249_v11 = vpop.f32.mrf.mxu0 }
0x10f1   :  { %v3567_v12 = vpop.f32.mrf.mxu0 }
0x10f2   :  { %v2345_v14 = vadd.f32 %v3725_v13, %v3567_v12 }
0x10f3   :  { %v2339_v15 = vpop.f32.mrf.mxu0 }
0x10f4   :  { %v2340_v17 = vadd.f32 %v3726_v16, %v2339_v15  ;;  %v2351_v19 = vsel %vm267_vm2, %v2345_v14, -inf  ;;  %v3234_v15 = vld [vmem:[%s4367_s5 + $0x1] ss:$0 sm:$0xff] }
0x10f5   :  { %2352 = vmax.xlane.f32.xlu0 %v2351_v19 }
0x10f6   :  { %v2348_v21 = vsel %vm267_vm2, %v2340_v17, -inf }
0x10f9   :  { %2349 = vmax.xlane.f32.xlu0 %v2348_v21  ;;  %v3586_v22 = vpop.f32.mrf.mxu0 }
0x10fa   :  { %v2628_v30 = vadd.f32 %v3725_v13, %v3586_v22 }
0x10fb   :  { %v2622_v23 = vpop.f32.mrf.mxu0 }
0x10fc   :  { %v2623_v24 = vadd.f32 %v3726_v16, %v2622_v23  ;;  %v2634_v31 = vsel %vm267_vm2, %v2628_v30, -inf }
0x10fe   :  { %v2631_v25 = vsel %vm267_vm2, %v2623_v24, -inf }
0x10ff   :  { %2632 = vmax.xlane.f32.xlu1 %v2631_v25  ;;  %v3560_v27 = vpop.f32.mrf.mxu1 }
0x1100   :  { %v4254_v29 = vadd.f32 %v3560_v27, %v3555_v9 }
0x1101   :  { %v2248_v49 = vpop.f32.mrf.mxu1 }
0x1102   :  { %v2249_v0 = vadd.f32 %v2248_v49, %v4249_v11 }
0x110f   :  { %2366 = vrot.lane.b32.xlu0 %v4151_v62, %s3806_s30 }
0x112e   :  { %2635 = vmax.xlane.f32.xlu0 %v2634_v31 }
0x117e   :  { %v2353_v26 = vpop.xlane.xlu0 %2352 }
0x117f   :  { %v2355_v32 = vsub.f32 %v2345_v14, %v2353_v26 }
0x1181   :  { %v2358_v33 = vmul.f32 1.442695, %v2355_v32 }
0x1182   :  { %v2350_v28 = vpop.xlane.xlu0 %2349 }
0x1183   :  { %3701 = vpow2.f32 %v2358_v33  ;;  %v2354_v34 = vsub.f32 %v2340_v17, %v2350_v28 }
0x1185   :  { %v2356_v35 = vmul.f32 1.442695, %v2354_v34 }
0x1186   :  { %v2367_v36 = vpop.permute.xlu0 %2366 }
0x1187   :  { %3703 = vpow2.f32 %v2356_v35  ;;  %3570 = vmatprep.subr.mxu1 %v2367_v36  ;;  %v3241_v35 = vld [vmem:[%s4370_s8 + $0x30] sm:$0xff] }
0x1188   :  { %3571 = vmatpush3.msra.mxu1 %v2367_v36  ;;  %v2633_v40 = vpop.xlane.xlu1 %2632  ;;  %v3240_v36 = vld [vmem:[%s4370_s8 + $0x28] sm:$0xff] }
0x1189   :  { %3575 = vmatprep.subr.mxu1 %v3199_v39  ;;  %v2637_v41 = vsub.f32 %v2623_v24, %v2633_v40 }
0x118b   :  { %v2639_v42 = vmul.f32 1.442695, %v2637_v41 }
0x118d   :  { %3705 = vpow2.f32 %v2639_v42 }
0x1190   :  { %v3702_v18 = vpop.eup %3701 }
0x1191   :  { %v2363_v37 = vsel %vm267_vm2, %v3702_v18, 0.0 }
0x1192   :  { %2364 = vadd.xlane.f32.xlu0 %v2363_v37  ;;  %v3254_v37 = vld [vmem:[%s4372_s10 + $0x78] sm:$0xff] }
0x1194   :  { %v3704_v20 = vpop.eup %3703 }
0x1195   :  { %3572 = vmatprep.mubr.msk.f32.mxu1 %vm267_vm2, %v3704_v20  ;;  %v2360_v38 = vsel %vm267_vm2, %v3704_v20, 0.0  ;;  %v3253_v20 = vld [vmem:[%s4372_s10 + $0x70] sm:$0xff] }
0x1196   :  { %2361 = vadd.xlane.f32.xlu1 %v2360_v38  ;;  %3573 = vmatmul.mubr.msk.f32.vlgmr.msra.gmra.mxu1 %vm267_vm2, %v3702_v18  ;;  %v3239_v18 = vld [vmem:[%s4370_s8 + $0x20] sm:$0xff]  ;;  %v3252_v38 = vld [vmem:[%s4372_s10 + $0x68] sm:$0xff] }
0x1197   :  { %3576 = vmatpush3.msra.mxu1 %v3199_v39  ;;  %v3251_v39 = vld [vmem:[%s4372_s10 + $0x60] sm:$0xff] }
0x119a   :  { %v3706_v46 = vpop.eup %3705 }
0x119b   :  { %v2643_v2 = vsel %vm267_vm2, %v3706_v46, 0.0 }
0x11a7   :  { %2651 = vrot.lane.b32.xlu1 %v4149_v60, %s4381_s24 }
0x11a8   :  { %2649 = vrot.lane.b32.xlu0 %v4151_v62, %s4381_s24 }
0x11b7   :  { %v2636_v43 = vpop.xlane.xlu0 %2635 }
0x11b8   :  { %v2638_v44 = vsub.f32 %v2628_v30, %v2636_v43 }
0x11ba   :  { %v2641_v45 = vmul.f32 1.442695, %v2638_v44 }
0x11bc   :  { %3707 = vpow2.f32 %v2641_v45 }
0x11c9   :  { %v3708_v5 = vpop.eup %3707 }
0x11ca   :  { %v2646_v47 = vsel %vm267_vm2, %v3708_v5, 0.0 }
0x11cb   :  { %2644 = vadd.xlane.f32.xlu1 %v2643_v2  ;;  %2647 = vadd.xlane.f32.xlu0 %v2646_v47 }
0x121b   :  { %v2365_v62 = vpop.xlane.xlu0 %2364 }
0x121f   :  { %v2362_v60 = vpop.xlane.xlu1 %2361  ;;  %v2650_v58 = vpop.permute.xlu0 %2649 }
0x1220   :  { %3709 = vrcp.f32 %v2362_v60 }
0x1221   :  { %3711 = vrcp.f32 %v2365_v62  ;;  %v3238_v62 = vld [vmem:[%s4369_s7 + $0x1] ss:$0 sm:$0xff] }
0x1223   :  { %v2652_v48 = vpop.permute.xlu1 %2651 }
0x1224   :  { %3587 = vmatprep.subr.mxu1 %v2652_v48 }
0x122d   :  { %v3710_v51 = vpop.eup %3709 }
0x122e   :  { %v3712_v53 = vpop.eup %3711 }
0x1254   :  { %v2645_v61 = vpop.xlane.xlu1 %2644  ;;  %v2648_v63 = vpop.xlane.xlu0 %2647 }
0x1255   :  { %3713 = vrcp.f32 %v2645_v61 }
0x1256   :  { %v3574_v50 = vpop.f32.mrf.mxu1  ;;  %3715 = vrcp.f32 %v2648_v63 }
0x1257   :  { %v2456_v55 = vmul.f32 %v3712_v53, %v3574_v50  ;;  %v3249_v53 = vld [vmem:[%s4372_s10 + $0x50] sm:$0xff] }
0x1258   :  { %v2444_v52 = vpop.f32.mrf.mxu1 }
0x1259   :  { %v2454_v54 = vmul.f32 %v3710_v51, %v2444_v52  ;;  %v3250_v52 = vld [vmem:[%s4372_s10 + $0x58] sm:$0xff] }
0x125b   :  { %3577 = vmatprep.mubr.msk.f32.mxu1 %vm183_vm1, %v2454_v54  ;;  %v3248_v54 = vld [vmem:[%s4372_s10 + $0x48] sm:$0xff] }
0x125c   :  { %3578 = vmatmul.mubr.msk.f32.vlgmr.msra.gmra.mxu1 %vm183_vm1, %v2456_v55  ;;  %v3247_v55 = vld [vmem:[%s4372_s10 + $0x40] sm:$0xff] }
0x125d   :  { %3588 = vmatpush3.msra.mxu1 %v2652_v48  ;;  %3591 = vmatprep.mubr.msk.f32.mxu1 %vm267_vm2, %v3706_v46 }
0x125e   :  { %3589 = vmatprep.subr.mxu1 %v2650_v58 }
0x125f   :  { %3590 = vmatpush3.msra.mxu1 %v2650_v58  ;;  %v3244_v58 = vld [vmem:[%s4371_s9 + $0x1] ss:$0 sm:$0xff] }
0x1260   :  { %3592 = vmatmul.mubr.msk.f32.vlgmr.msra.gmra.mxu1 %vm267_vm2, %v3708_v5  ;;  %3594 = vmatprep.subr.mxu1 %v3200_v59  ;;  %v3237_v5 = vld [vmem:[%s4368_s6 + $0x1] ss:$0 sm:$0xff] }
0x1261   :  { %3595 = vmatpush3.msra.mxu1 %v3200_v59 }
0x1262   :  { %v3714_v6 = vpop.eup %3713  ;;  %3610 = vmatprep.subr.mxu1 %v3254_v37 }
0x1263   :  { %v3716_v9 = vpop.eup %3715 }
0x131c   :  { %v3579_v8 = vpop.f32.mrf.mxu1 }
0x131d   :  { %v2539_v10 = vadd.f32 %v3579_v8, %v4254_v29 }
0x131e   :  { %v2529_v1 = vpop.f32.mrf.mxu1 }
0x131f   :  { %v2538_v3 = vadd.f32 %v2529_v1, %v2249_v0  ;;  %v3256_v1 = vld [vmem:[%s4373_s11 + $0x1] ss:$0 sm:$0xff] }
0x1320   :  { %v3593_v4 = vpop.f32.mrf.mxu1 }
0x1321   :  { %v2739_v13 = vmul.f32 %v3716_v9, %v3593_v4 }
0x1322   :  { %v2727_v7 = vpop.f32.mrf.mxu1 }
0x1323   :  { %v2737_v12 = vmul.f32 %v3714_v6, %v2727_v7 }
0x1325   :  { %3596 = vmatprep.mubr.msk.f32.mxu1 %vm183_vm1, %v2737_v12 }
0x1326   :  { %3597 = vmatmul.mubr.msk.f32.vlgmr.msra.gmra.mxu1 %vm183_vm1, %v2739_v13 }
0x1327   :  { %3611 = vmatpush3.msra.mxu1 %v3254_v37 }
0x1328   :  { %3612 = vmatprep.subr.mxu1 %v3253_v20 }
0x1329   :  { %3613 = vmatpush3.msra.mxu1 %v3253_v20 }
0x132a   :  { %3614 = vmatprep.subr.mxu1 %v3252_v38 }
0x132b   :  { %3615 = vmatpush3.msra.mxu1 %v3252_v38 }
0x132c   :  { %3616 = vmatprep.subr.mxu1 %v3251_v39 }
0x132d   :  { %3617 = vmatpush3.msra.mxu1 %v3251_v39 }
0x132e   :  { %3618 = vmatprep.subr.mxu1 %v3250_v52 }
0x132f   :  { %3619 = vmatpush3.msra.mxu1 %v3250_v52 }
0x1330   :  { %3620 = vmatprep.subr.mxu1 %v3249_v53 }
0x1331   :  { %3621 = vmatpush3.msra.mxu1 %v3249_v53 }
0x1332   :  { %3622 = vmatprep.subr.mxu1 %v3248_v54 }
0x1333   :  { %3623 = vmatpush3.msra.mxu1 %v3248_v54 }
0x1334   :  { %3624 = vmatprep.subr.mxu1 %v3247_v55 }
0x1335   :  { %3625 = vmatpush3.msra.mxu1 %v3247_v55 }
0x13e6   :  { %v3598_v14 = vpop.f32.mrf.mxu1 }
0x13e7   :  { %v2822_v11 = vadd.f32 %v3598_v14, %v2539_v10 }
0x13e8   :  { %v2812_v16 = vpop.f32.mrf.mxu1 }
0x13e9   :  { %v2832_v17 = vadd.f32 %v3234_v15, %v2822_v11  ;;  %v2821_v19 = vadd.f32 %v2812_v16, %v2538_v3 }
0x13eb   :  { %v2831_v21 = vadd.f32 %v3234_v15, %v2821_v19  ;;  %v2834_v22 = vadd.f32 %v2832_v17, %v4140_v57 }
0x13ed   :  { %v2842_v23 = vsel %vm91_vm0, %v2834_v22, 0.0  ;;  %v2833_v24 = vadd.f32 %v2831_v21, %v4138_v56  ;;  %v3242_v56 = vld [vmem:[%s4370_s8 + $0x38] sm:$0xff] }
0x13ee   :  { %2843 = vadd.xlane.f32.xlu0 %v2842_v23  ;;  %3599 = vmatprep.subr.mxu0 %v3242_v56 }
0x13ef   :  { %v2839_v25 = vsel %vm91_vm0, %v2833_v24, 0.0  ;;  %3600 = vmatpush3.msra.mxu0 %v3242_v56  ;;  %v3262_v56 = vld [vmem:[%s4375_s13 + $0x1] ss:$0 sm:$0xff] }
0x13f0   :  { %2840 = vadd.xlane.f32.xlu1 %v2839_v25  ;;  %3601 = vmatprep.subr.mxu0 %v3241_v35 }
0x13f1   :  { %3602 = vmatpush3.msra.mxu0 %v3241_v35 }
0x13f2   :  { %3603 = vmatprep.subr.mxu0 %v3240_v36 }
0x13f3   :  { %3604 = vmatpush3.msra.mxu0 %v3240_v36 }
0x13f4   :  { %3605 = vmatprep.subr.mxu0 %v3239_v18 }
0x13f5   :  { %3606 = vmatpush3.msra.mxu0 %v3239_v18 }
0x1477   :  { %v2844_v27 = vpop.xlane.xlu0 %2843 }
0x1478   :  { %v2846_v29 = vmul.f32 0.03125, %v2844_v27 }
0x1479   :  { %v2841_v30 = vpop.xlane.xlu1 %2840 }
0x147a   :  { %v2848_v31 = vsub.f32 %v2834_v22, %v2846_v29  ;;  %v2845_v26 = vmul.f32 0.03125, %v2841_v30 }
0x147c   :  { %v2847_v32 = vsub.f32 %v2833_v24, %v2845_v26  ;;  %v2850_v33 = vmul.f32 %v2848_v31, %v2848_v31 }
0x147e   :  { %v2854_v28 = vsel %vm91_vm0, %v2850_v33, 0.0  ;;  %v2849_v34 = vmul.f32 %v2847_v32, %v2847_v32 }
0x147f   :  { %2855 = vadd.xlane.f32.xlu0 %v2854_v28  ;;  %v3261_v28 = vld [vmem:[%s4374_s12 + $0x1] ss:$0 sm:$0xff] }
0x1480   :  { %v2851_v57 = vsel %vm91_vm0, %v2849_v34, 0.0 }
0x1481   :  { %2852 = vadd.xlane.f32.xlu1 %v2851_v57 }
0x1508   :  { %v2856_v40 = vpop.xlane.xlu0 %2855 }
0x1509   :  { %v2858_v41 = vmul.f32 0.03125, %v2856_v40 }
0x150a   :  { %v2853_v42 = vpop.xlane.xlu1 %2852 }
0x150b   :  { %v2860_v43 = vadd.f32 1e-05, %v2858_v41  ;;  %v2857_v44 = vmul.f32 0.03125, %v2853_v42 }
0x150d   :  { %3717 = vrsqrt.f32 %v2860_v43  ;;  %v2859_v45 = vadd.f32 1e-05, %v2857_v44 }
0x150f   :  { %3719 = vrsqrt.f32 %v2859_v45 }
0x151a   :  { %v3718_v46 = vpop.eup %3717 }
0x151b   :  { %v2864_v2 = vmul.f32 %v3718_v46, %v2848_v31 }
0x151c   :  { %v3720_v47 = vpop.eup %3719 }
0x151d   :  { %v2863_v60 = vmul.f32 %v3720_v47, %v2847_v32  ;;  %v2872_v48 = vmul.f32 %v3237_v5, %v2864_v2 }
0x151f   :  { %v2871_v49 = vmul.f32 %v3237_v5, %v2863_v60  ;;  %v2880_v51 = vadd.f32 %v3238_v62, %v2872_v48 }
0x1521   :  { %v2879_v50 = vadd.f32 %v3238_v62, %v2871_v49 }
0x1523   :  { %3607 = vmatprep.mubr.msk.f32.mxu0 %vm91_vm0, %v2879_v50 }
0x1524   :  { %3608 = vmatmul.mubr.msk.f32.vlgmr.msra.gmra.mxu0 %vm91_vm0, %v2880_v51 }
0x15e4   :  { %v3609_v59 = vpop.f32.mrf.mxu0 }
0x15e5   :  { %v2972_v61 = vadd.f32 %v3609_v59, %v3244_v58 }
0x15e6   :  { %v2966_v63 = vpop.f32.mrf.mxu0 }
0x15e7   :  { %v2967_v8 = vadd.f32 %v3244_v58, %v2966_v63  ;;  %v2976_v10 = vmax.f32 %v2972_v61, 0.0 }
0x15e9   :  { %v2975_v0 = vmax.f32 %v2967_v8, 0.0 }
0x15eb   :  { %3626 = vmatprep.mubr.msk.f32.mxu1 %vm1470_vm3, %v2975_v0 }
0x15ec   :  { %3627 = vmatmul.mubr.msk.f32.vlgmr.msra.gmra.mxu1 %vm1470_vm3, %v2976_v10 }
0x16ac   :  { %v3628_v3 = vpop.f32.mrf.mxu1 }
0x16ad   :  { %v3072_v4 = vadd.f32 %v3628_v3, %v3256_v1 }
0x16ae   :  { %v3066_v6 = vpop.f32.mrf.mxu1 }
0x16af   :  { %v3067_v7 = vadd.f32 %v3256_v1, %v3066_v6  ;;  %v3076_v9 = vadd.f32 %v3072_v4, %v2880_v51 }
0x16b1   :  { %v3084_v12 = vsel %vm91_vm0, %v3076_v9, 0.0  ;;  %v3075_v13 = vadd.f32 %v3067_v7, %v2879_v50 }
0x16b2   :  { %3085 = vadd.xlane.f32.xlu0 %v3084_v12 }
0x16b3   :  { %v3081_v14 = vsel %vm91_vm0, %v3075_v13, 0.0 }
0x16b4   :  { %3082 = vadd.xlane.f32.xlu1 %v3081_v14 }
0x173b   :  { %v3086_v15 = vpop.xlane.xlu0 %3085 }
0x173c   :  { %v3088_v11 = vmul.f32 0.03125, %v3086_v15 }
0x173d   :  { %v3083_v16 = vpop.xlane.xlu1 %3082 }
0x173e   :  { %v3090_v17 = vsub.f32 %v3076_v9, %v3088_v11  ;;  %v3087_v19 = vmul.f32 0.03125, %v3083_v16 }
0x1740   :  { %v3089_v21 = vsub.f32 %v3075_v13, %v3087_v19  ;;  %v3092_v22 = vmul.f32 %v3090_v17, %v3090_v17 }
0x1742   :  { %v3096_v23 = vsel %vm91_vm0, %v3092_v22, 0.0  ;;  %v3091_v24 = vmul.f32 %v3089_v21, %v3089_v21 }
0x1743   :  { %3097 = vadd.xlane.f32.xlu0 %v3096_v23 }
0x1744   :  { %v3093_v25 = vsel %vm91_vm0, %v3091_v24, 0.0 }
0x1745   :  { %3094 = vadd.xlane.f32.xlu1 %v3093_v25 }
0x17cc   :  { %v3098_v27 = vpop.xlane.xlu0 %3097 }
0x17cd   :  { %v3100_v29 = vmul.f32 0.03125, %v3098_v27 }
0x17ce   :  { %v3095_v30 = vpop.xlane.xlu1 %3094 }
0x17cf   :  { %v3102_v31 = vadd.f32 1e-05, %v3100_v29  ;;  %v3099_v26 = vmul.f32 0.03125, %v3095_v30 }
0x17d1   :  { %3721 = vrsqrt.f32 %v3102_v31  ;;  %v3101_v32 = vadd.f32 1e-05, %v3099_v26 }
0x17d3   :  { %3723 = vrsqrt.f32 %v3101_v32 }
0x17de   :  { %v3722_v33 = vpop.eup %3721 }
0x17df   :  { %v3106_v34 = vmul.f32 %v3722_v33, %v3090_v17 }
0x17e0   :  { %v3724_v57 = vpop.eup %3723 }
0x17e1   :  { %v3105_v35 = vmul.f32 %v3724_v57, %v3089_v21  ;;  %v3114_v36 = vmul.f32 %v3261_v28, %v3106_v34 }
0x17e3   :  { %v3113_v18 = vmul.f32 %v3261_v28, %v3105_v35  ;;  %v3122_v37 = vadd.f32 %v3262_v56, %v3114_v36 }
0x17e5   :  { %v3121_v20 = vadd.f32 %v3262_v56, %v3113_v18  ;;  %3124 = vst.msk [vmem:[#allocation7 + $0x8] sm:$0xff] %vm91_vm0, %v3122_v37 }
0x17e7   :  { %3123 = vst.msk [vmem:[#allocation7] sm:$0xff] %vm91_vm0, %v3121_v20 }
0x17e8   :  { %3778 = shalt.err (!%p3775_p0)
}
0x17e9   :  { %s4382_s12 = smov 8   ;;  %s4383_s13 = smov 128  }
0x17ea   :  { %3136 = dma.vmem_to_hbm [thread:$0]  %s3131_s1, 256, %s4376_s14, [#allocation4], %s4383_s13, %s4383_s13, %s4382_s12  }
0x17eb   :  { %3791 = dma.done.wait [#allocation4], 256  }
0x17ec   :  { %3792 = vsyncadd [#allocation4], 4294967040 }
0x17ed   :  { %3140 = vsyncpa [#allocation3], 1 }
0x17ee   :  { %3141 = vsyncpa [#allocation6], 1 }
0x17ef   :  { %3142 = vsyncpa [#allocation4], 1 }

</bundles_post_ra>
